<compile_context>
chip_gen: v7x
topology: tpu7x:2x2x1
jax: 0.10.0
libtpu: 0.0.40
codegen_flags: <defaults>
</compile_context>

<pallas_src>
import functools
from collections import namedtuple

import jax
import jax.numpy as jnp
from jax.experimental import pallas as pl
from jax.experimental.pallas import tpu as pltpu

LANE = 128

LossTuple = namedtuple(
    "LossTuple",
    ["rpn_loc_loss", "rpn_cls_loss", "roi_loc_loss", "roi_cls_loss", "total_loss"],
)


# ----------------------------------------------------------------------------
# Elementwise smooth-L1 (single select form)
# ----------------------------------------------------------------------------
def _smooth_l1(diff, sigma2):
    abs_d = jnp.abs(diff)
    return jnp.where(
        abs_d < (1.0 / sigma2),
        (0.5 * sigma2) * diff * diff,
        abs_d - (0.5 / sigma2),
    )


# ----------------------------------------------------------------------------
# Fused, gridded Pallas kernel
# ----------------------------------------------------------------------------
def _fused_loss_kernel(
    rpn_loc_ref,      # (TLOC, 128) packed predicted RPN deltas (4 coords/anchor)
    gt_rpn_loc_ref,   # (TLOC, 128) packed target RPN deltas
    rpn_pos4_ref,     # (TLOC, 128) f32 in-weight mask (label>0) expanded x4
    rpn_l0_ref,       # (TLAB, 128) bg logits (class 0)
    rpn_l1_ref,       # (TLAB, 128) fg logits (class 1)
    rpn_label_ref,    # (TLAB, 128) int32 labels {-1, 0, 1}
    roi_cls_loc_ref,  # (R, n_class*4) class-wise ROI deltas (resident block)
    gt_roi_loc_ref,   # (R, 4) target ROI deltas
    roi_score_ref,    # (R, n_class) ROI logits
    roi_label_ref,    # (R, 1) int32 labels in [0, n_class)
    out_ref,          # (1, 8) SMEM: [rpn_loc, rpn_cls, roi_loc, roi_cls, total, 0,0,0]
    acc_ref,          # (8, 128) VMEM f32 per-lane partial-sum accumulator
    *,
    rpn_sigma2,
    roi_sigma2,
    n_roi,
):
    f32 = jnp.float32
    step = pl.program_id(0)
    last = pl.num_programs(0) - 1

    @pl.when(step == 0)
    def _init():
        acc_ref[...] = jnp.zeros_like(acc_ref)

    # -------------------- RPN localization (smooth-L1, sigma=3) -------------
    pred = rpn_loc_ref[...].astype(f32)
    gt = gt_rpn_loc_ref[...].astype(f32)
    diff = rpn_pos4_ref[...] * (pred - gt)                  # masked (label>0)
    sl1 = _smooth_l1(diff, rpn_sigma2)                      # (TLOC, 128)

    # --------- RPN classification: binary CE with ignore_index = -1 ---------
    # Elementwise two-logit form (VPU + EUP only), no cross-lane reductions.
    label = rpn_label_ref[...]                              # (TLAB, 128) int32
    l0 = rpn_l0_ref[...].astype(f32)
    l1 = rpn_l1_ref[...].astype(f32)
    lse = jnp.maximum(l0, l1) + jnp.log(1.0 + jnp.exp(-jnp.abs(l0 - l1)))
    picked = jnp.where(label == 1, l1, l0)
    valid = (label >= 0).astype(f32)                        # == (label != -1) here
    ce = (lse - picked) * valid

    # Per-step: only cheap sublane (axis=0) partial reductions; cross-lane
    # reductions are deferred to the final step (single pass through the XLU).
    acc_ref[0:1, :] = acc_ref[0:1, :] + jnp.sum(sl1, axis=0, keepdims=True)
    acc_ref[1:2, :] = acc_ref[1:2, :] + jnp.sum(valid, axis=0, keepdims=True)
    acc_ref[2:3, :] = acc_ref[2:3, :] + jnp.sum(ce, axis=0, keepdims=True)

    # ------------------------------ finalize ---------------------------------
    @pl.when(step == last)
    def _finalize():
        rpn_sl1_sum = jnp.sum(acc_ref[0:1, :])
        rpn_valid = jnp.sum(acc_ref[1:2, :])
        rpn_ce_sum = jnp.sum(acc_ref[2:3, :])
        # max(.,1) guard: diverges from PyTorch (which would NaN/inf) when no
        # valid labels exist.
        rpn_den = jnp.maximum(rpn_valid, 1.0)
        rpn_loc_loss = rpn_sl1_sum / rpn_den
        rpn_cls_loss = rpn_ce_sum / rpn_den

        # ---- ROI localization: masked full-width pass over (R, n_class*4) ----
        roi_label = roi_label_ref[...]                       # (R, 1) int32
        cls_loc = roi_cls_loc_ref[...].astype(f32)           # (R, NC*4)
        gt4 = gt_roi_loc_ref[...].astype(f32)                # (R, 4)
        col = jax.lax.broadcasted_iota(jnp.int32, cls_loc.shape, 1)
        sel = jnp.logical_and((col >> 2) == roi_label, roi_label > 0)
        c3 = col & 3
        # Replicate the 4 gt coords across every class slot with 3 selects
        # (pure VPU; no lane tiling / reshapes / per-class slices).
        gt_rep = jnp.where(
            c3 == 0, gt4[:, 0:1],
            jnp.where(c3 == 1, gt4[:, 1:2],
                      jnp.where(c3 == 2, gt4[:, 2:3], gt4[:, 3:4])))
        rdiff = jnp.where(sel, cls_loc - gt_rep, 0.0)
        roi_sl1_sum = jnp.sum(_smooth_l1(rdiff, roi_sigma2))
        roi_den = jnp.maximum(jnp.sum((roi_label >= 0).astype(f32)), 1.0)
        roi_loc_loss = roi_sl1_sum / roi_den

        # ---------------- ROI classification: CE over n_class -----------------
        # TODO(synk): lane-sparse (NC of 128 lanes) — acceptable while R is small.
        logits = roi_score_ref[...].astype(f32)              # (R, NC)
        m = jnp.max(logits, axis=1, keepdims=True)
        lse2 = m + jnp.log(jnp.sum(jnp.exp(logits - m), axis=1, keepdims=True))
        colc = jax.lax.broadcasted_iota(jnp.int32, logits.shape, 1)
        picked2 = jnp.sum(jnp.where(colc == roi_label, logits, 0.0),
                          axis=1, keepdims=True)
        roi_cls_loss = jnp.sum(lse2 - picked2) / f32(n_roi)

        total = rpn_loc_loss + rpn_cls_loss + roi_loc_loss + roi_cls_loss
        out_ref[0, 0] = rpn_loc_loss
        out_ref[0, 1] = rpn_cls_loss
        out_ref[0, 2] = roi_loc_loss
        out_ref[0, 3] = roi_cls_loss
        out_ref[0, 4] = total
        out_ref[0, 5] = jnp.float32(0.0)
        out_ref[0, 6] = jnp.float32(0.0)
        out_ref[0, 7] = jnp.float32(0.0)


# ----------------------------------------------------------------------------
# pallas_call wrapper: lane-dense repacking + grid setup
# ----------------------------------------------------------------------------
def fused_faster_rcnn_losses(
    rpn_loc, gt_rpn_loc, rpn_score, gt_rpn_label,
    roi_cls_loc, gt_roi_loc, roi_score, gt_roi_label,
    *, rpn_sigma, roi_sigma, n_class, anchor_rows_per_step=64,
):
    """anchor_rows_per_step = label rows (x128 anchors) processed per grid step.
    Per-generation VMEM budget: 64 keeps the per-step footprint ~1 MiB with
    double-buffering (safe on v5e/v6e/v7x); raise on v6e, lower on v7x if the
    per-input blocks are pushed toward multi-MiB sizes."""
    A = int(gt_rpn_label.shape[0])
    anchors_per_step = anchor_rows_per_step * LANE
    n_steps = -(-A // anchors_per_step)                     # ceil
    a_pad = n_steps * anchors_per_step
    pad = a_pad - A

    label = gt_rpn_label.astype(jnp.int32)
    if pad:
        # Padded anchors get label=-1 and zero loc/score -> contribute exactly 0.
        rpn_loc = jnp.pad(rpn_loc, ((0, pad), (0, 0)))
        gt_rpn_loc = jnp.pad(gt_rpn_loc, ((0, pad), (0, 0)))
        rpn_score = jnp.pad(rpn_score, ((0, pad), (0, 0)))
        label = jnp.pad(label, (0, pad), constant_values=-1)

    # Lane-dense repacking (row-major reshapes are free; the mask and the
    # logit de-interleave are tiny one-shot XLA ops fused into input prep).
    rpn_loc_p = rpn_loc.reshape(a_pad // 32, LANE)
    gt_rpn_loc_p = gt_rpn_loc.reshape(a_pad // 32, LANE)
    pos4_p = jnp.repeat((label > 0).astype(jnp.float32), 4).reshape(a_pad // 32, LANE)
    l0_p = rpn_score[:, 0].reshape(a_pad // LANE, LANE)
    l1_p = rpn_score[:, 1].reshape(a_pad // LANE, LANE)
    label_p = label.reshape(a_pad // LANE, LANE)
    roi_label2d = gt_roi_label.astype(jnp.int32).reshape(-1, 1)

    tlab = anchor_rows_per_step
    tloc = anchor_rows_per_step * 4

    kernel = functools.partial(
        _fused_loss_kernel,
        rpn_sigma2=float(rpn_sigma) ** 2,
        roi_sigma2=float(roi_sigma) ** 2,
        n_roi=int(roi_score.shape[0]),
    )

    in_specs = [
        pl.BlockSpec((tloc, LANE), lambda i: (i, 0)),        # rpn_loc
        pl.BlockSpec((tloc, LANE), lambda i: (i, 0)),        # gt_rpn_loc
        pl.BlockSpec((tloc, LANE), lambda i: (i, 0)),        # pos4 mask
        pl.BlockSpec((tlab, LANE), lambda i: (i, 0)),        # l0
        pl.BlockSpec((tlab, LANE), lambda i: (i, 0)),        # l1
        pl.BlockSpec((tlab, LANE), lambda i: (i, 0)),        # labels
        # ROI operands are small; keep them resident (constant block index ->
        # DMA'd once), consumed only at the last grid step.
        pl.BlockSpec(roi_cls_loc.shape, lambda i: (0, 0)),
        pl.BlockSpec(gt_roi_loc.shape, lambda i: (0, 0)),
        pl.BlockSpec(roi_score.shape, lambda i: (0, 0)),
        pl.BlockSpec(roi_label2d.shape, lambda i: (0, 0)),
    ]

    return pl.pallas_call(
        kernel,
        out_shape=jax.ShapeDtypeStruct((1, 8), jnp.float32),
        grid=(n_steps,),
        in_specs=in_specs,
        out_specs=pl.BlockSpec(memory_space=pltpu.MemorySpace.SMEM),
        scratch_shapes=[pltpu.VMEM((8, LANE), jnp.float32)],
        compiler_params=pltpu.CompilerParams(
            dimension_semantics=("arbitrary",),
            vmem_limit_bytes=32 * 1024 * 1024,
        ),
    )(rpn_loc_p, gt_rpn_loc_p, pos4_p, l0_p, l1_p, label_p,
      roi_cls_loc, gt_roi_loc, roi_score, roi_label2d)


# ----------------------------------------------------------------------------
# Trainer (loss composition only — glue in plain JAX)
# ----------------------------------------------------------------------------
class FasterRCNNTrainerPallas:
    def __init__(self, n_class, anchor_rows_per_step=64):
        self.n_class = n_class
        self.rpn_sigma = 3.0
        self.roi_sigma = 1.0
        self.anchor_rows_per_step = anchor_rows_per_step

    def forward(
        self,
        imgs, bboxes, labels, scale,
        rpn_locs, rpn_scores, gt_rpn_loc, gt_rpn_label,
        roi_cls_loc, roi_score, gt_roi_loc, gt_roi_label,
    ):
        # TODO(synk): faster_rcnn.extractor / rpn / head and the Anchor/Proposal
        # TargetCreators (IoU matching, NMS, random fg/bg subsampling) are
        # external modules with no clean Pallas equivalent; their outputs are
        # passed in as deterministic synthetic tensors.
        del imgs, bboxes, labels, scale  # consumed by the external submodules above

        out = fused_faster_rcnn_losses(
            rpn_locs[0], gt_rpn_loc, rpn_scores[0], gt_rpn_label,
            roi_cls_loc, gt_roi_loc, roi_score, gt_roi_label,
            rpn_sigma=self.rpn_sigma, roi_sigma=self.roi_sigma,
            n_class=self.n_class,
            anchor_rows_per_step=self.anchor_rows_per_step,
        )
        return LossTuple(out[0, 0], out[0, 1], out[0, 2], out[0, 3], out[0, 4])


# ----------------------------------------------------------------------------
# Pure-JAX reference (mirrors the PyTorch math) for a sanity check
# ----------------------------------------------------------------------------
def _ref_smooth_l1(x, t, in_w, sigma):
    s2 = sigma ** 2
    diff = in_w * (x - t)
    ad = jnp.abs(diff)
    flag = (ad < (1.0 / s2)).astype(jnp.float32)
    return jnp.sum(flag * (s2 / 2.0) * diff ** 2 + (1.0 - flag) * (ad - 0.5 / s2))


def _ref_loc_loss(pred, gt, label, sigma):
    in_w = jnp.broadcast_to((label > 0).astype(jnp.float32)[:, None], gt.shape)
    return _ref_smooth_l1(pred, gt, in_w, sigma) / jnp.sum(label >= 0)


def _ref_ce(scores, label, ignore=None):
    logp = jax.nn.log_softmax(scores, axis=1)
    safe = jnp.clip(label, 0, scores.shape[1] - 1)
    nll = -jnp.take_along_axis(logp, safe[:, None], axis=1)[:, 0]
    valid = jnp.ones_like(nll) if ignore is None else (label != ignore).astype(jnp.float32)
    return jnp.sum(nll * valid) / jnp.sum(valid)


# ----------------------------------------------------------------------------
if __name__ == "__main__":
    key = jax.random.PRNGKey(0)
    ks = jax.random.split(key, 12)

    N, C, H, W = 1, 3, 16, 16     # image batch (shape-fidelity only)
    R_GT = 4                      # ground-truth boxes per image
    A = 2048                      # flattened anchors (16x16 map x 8 anchors)
    R = 64                        # sampled ROIs
    NC = 8                        # number of classes (incl. background)

    imgs = jax.random.normal(ks[0], (N, C, H, W), jnp.float32)
    bboxes = jax.random.uniform(ks[1], (N, R_GT, 4), jnp.float32) * H
    labels = jax.random.randint(ks[2], (N, R_GT), 0, NC - 1)
    scale = 1.0

    # Synthetic stand-ins for RPN / head outputs and target-creator outputs.
    rpn_locs = jax.random.normal(ks[3], (N, A, 4), jnp.float32)
    rpn_scores = jax.random.normal(ks[4], (N, A, 2), jnp.float32)
    gt_rpn_loc = jax.random.normal(ks[5], (A, 4), jnp.float32)
    gt_rpn_label = jax.random.randint(ks[6], (A,), -1, 2)        # {-1, 0, 1}

    roi_cls_loc = jax.random.normal(ks[7], (R, NC * 4), jnp.float32)
    roi_score = jax.random.normal(ks[8], (R, NC), jnp.float32)
    gt_roi_loc = jax.random.normal(ks[9], (R, 4), jnp.float32)
    gt_roi_label = jax.random.randint(ks[10], (R,), 0, NC)       # [0, NC)

    # anchor_rows_per_step=8 -> 1024 anchors per grid step -> 2-step grid at
    # this toy size (exercises the accumulator init/accumulate/finalize path).
    trainer = FasterRCNNTrainerPallas(n_class=NC, anchor_rows_per_step=8)
    losses = trainer.forward(
        imgs, bboxes, labels, scale,
        rpn_locs, rpn_scores, gt_rpn_loc, gt_rpn_label,
        roi_cls_loc, roi_score, gt_roi_loc, gt_roi_label,
    )
    losses = jax.tree_util.tree_map(jax.block_until_ready, losses)

    # Reference check (pure JAX, same math as the PyTorch module).
    ref_rpn_loc = _ref_loc_loss(rpn_locs[0], gt_rpn_loc, gt_rpn_label, 3.0)
    ref_rpn_cls = _ref_ce(rpn_scores[0], gt_rpn_label, ignore=-1)
    roi_loc_gathered = roi_cls_loc.reshape(R, NC, 4)[jnp.arange(R), gt_roi_label]
    ref_roi_loc = _ref_loc_loss(roi_loc_gathered, gt_roi_loc, gt_roi_label, 1.0)
    ref_roi_cls = _ref_ce(roi_score, gt_roi_label, ignore=None)
    refs = [ref_rpn_loc, ref_rpn_cls, ref_roi_loc, ref_roi_cls,
            ref_rpn_loc + ref_rpn_cls + ref_roi_loc + ref_roi_cls]

    for got, want in zip(losses, refs):
        assert jnp.allclose(got, want, rtol=1e-4, atol=1e-4), (got, want)

    print("KERNEL_OK")
</pallas_src>

<mosaic_0001>
module attributes {stable_mosaic.version = 11 : i64} {
  func.func @_fused_loss_kernel(%arg0: i32, %arg1: memref<32x128xf32, #tpu.memory_space<vmem>>, %arg2: memref<32x128xf32, #tpu.memory_space<vmem>>, %arg3: memref<32x128xf32, #tpu.memory_space<vmem>>, %arg4: memref<8x128xf32, #tpu.memory_space<vmem>>, %arg5: memref<8x128xf32, #tpu.memory_space<vmem>>, %arg6: memref<8x128xi32, #tpu.memory_space<vmem>>, %arg7: memref<64x32xf32, #tpu.memory_space<vmem>>, %arg8: memref<64x4xf32, #tpu.memory_space<vmem>>, %arg9: memref<64x8xf32, #tpu.memory_space<vmem>>, %arg10: memref<64x1xi32, #tpu.memory_space<vmem>>, %arg11: memref<1x8xf32, #tpu.memory_space<smem>>, %arg12: memref<8x128xf32, #tpu.memory_space<vmem>>) attributes {dimension_semantics = [#tpu.dimension_semantics<arbitrary>], iteration_bounds = array<i64: 2>, scalar_prefetch = 0 : i64, scratch_operands = 1 : i64, tpu.core_type = #tpu.core_type<tc>, window_params = [{transform_indices = @transform_0, window_bounds = array<i64: 32, 128>}, {transform_indices = @transform_1, window_bounds = array<i64: 32, 128>}, {transform_indices = @transform_2, window_bounds = array<i64: 32, 128>}, {transform_indices = @transform_3, window_bounds = array<i64: 8, 128>}, {transform_indices = @transform_4, window_bounds = array<i64: 8, 128>}, {transform_indices = @transform_5, window_bounds = array<i64: 8, 128>}, {pipeline_mode = #tpu.pipeline_mode<synchronous>, transform_indices = @transform_6, window_bounds = array<i64: 64, 32>}, {pipeline_mode = #tpu.pipeline_mode<synchronous>, transform_indices = @transform_7, window_bounds = array<i64: 64, 4>}, {pipeline_mode = #tpu.pipeline_mode<synchronous>, transform_indices = @transform_8, window_bounds = array<i64: 64, 8>}, {pipeline_mode = #tpu.pipeline_mode<synchronous>, transform_indices = @transform_9, window_bounds = array<i64: 64, 1>}, {transform_indices = @transform_10, window_bounds = array<i64: 1, 8>}]} {
    %c0_i32 = arith.constant 0 : i32
    %0 = arith.cmpi eq, %arg0, %c0_i32 : i32
    %1 = arith.extui %0 : i1 to i32
    %c0_i32_0 = arith.constant 0 : i32
    %2 = arith.cmpi ne, %1, %c0_i32_0 : i32
    scf.if %2 {
      %cst_32 = arith.constant 0.000000e+00 : f32
      %57 = vector.broadcast %cst_32 : f32 to vector<8x128xf32>
      %c0_33 = arith.constant 0 : index
      %c0_34 = arith.constant 0 : index
      %58 = vector.load %arg12[%c0_33, %c0_34] : memref<8x128xf32, #tpu.memory_space<vmem>>, vector<8x128xf32>
      tpu.vector_store %arg12[%c0_33, %c0_34], %57 {strides = array<i32>} : memref<8x128xf32, #tpu.memory_space<vmem>>, vector<8x128xf32>,
    } else {
    }
    %c0 = arith.constant 0 : index
    %c0_1 = arith.constant 0 : index
    %3 = vector.load %arg1[%c0, %c0_1] : memref<32x128xf32, #tpu.memory_space<vmem>>, vector<32x128xf32>
    %c0_2 = arith.constant 0 : index
    %c0_3 = arith.constant 0 : index
    %4 = vector.load %arg2[%c0_2, %c0_3] : memref<32x128xf32, #tpu.memory_space<vmem>>, vector<32x128xf32>
    %c0_4 = arith.constant 0 : index
    %c0_5 = arith.constant 0 : index
    %5 = vector.load %arg3[%c0_4, %c0_5] : memref<32x128xf32, #tpu.memory_space<vmem>>, vector<32x128xf32>
    %6 = arith.subf %3, %4 : vector<32x128xf32>
    %7 = arith.mulf %5, %6 : vector<32x128xf32>
    %8 = math.absf %7 : vector<32x128xf32>
    %cst = arith.constant 0.111111112 : f32
    %9 = vector.broadcast %cst : f32 to vector<32x128xf32>
    %10 = arith.cmpf olt, %8, %9 : vector<32x128xf32>
    %cst_6 = arith.constant 4.500000e+00 : f32
    %11 = vector.broadcast %cst_6 : f32 to vector<32x128xf32>
    %12 = arith.mulf %11, %7 : vector<32x128xf32>
    %13 = arith.mulf %12, %7 : vector<32x128xf32>
    %cst_7 = arith.constant 0.055555556 : f32
    %14 = vector.broadcast %cst_7 : f32 to vector<32x128xf32>
    %15 = arith.subf %8, %14 : vector<32x128xf32>
    %16 = arith.select %10, %13, %15 : vector<32x128xi1>, vector<32x128xf32>
    %c0_8 = arith.constant 0 : index
    %c0_9 = arith.constant 0 : index
    %17 = vector.load %arg6[%c0_8, %c0_9] : memref<8x128xi32, #tpu.memory_space<vmem>>, vector<8x128xi32>
    %c0_10 = arith.constant 0 : index
    %c0_11 = arith.constant 0 : index
    %18 = vector.load %arg4[%c0_10, %c0_11] : memref<8x128xf32, #tpu.memory_space<vmem>>, vector<8x128xf32>
    %c0_12 = arith.constant 0 : index
    %c0_13 = arith.constant 0 : index
    %19 = vector.load %arg5[%c0_12, %c0_13] : memref<8x128xf32, #tpu.memory_space<vmem>>, vector<8x128xf32>
    %20 = arith.maximumf %18, %19 : vector<8x128xf32>
    %21 = arith.subf %18, %19 : vector<8x128xf32>
    %22 = math.absf %21 : vector<8x128xf32>
    %cst_14 = arith.constant 0.000000e+00 : f32
    %23 = vector.broadcast %cst_14 : f32 to vector<8x128xf32>
    %24 = arith.subf %23, %22 : vector<8x128xf32>
    %25 = math.exp %24 : vector<8x128xf32>
    %cst_15 = arith.constant 1.000000e+00 : f32
    %26 = vector.broadcast %cst_15 : f32 to vector<8x128xf32>
    %27 = arith.addf %26, %25 : vector<8x128xf32>
    %28 = math.log %27 : vector<8x128xf32>
    %29 = arith.addf %20, %28 : vector<8x128xf32>
    %c1_i32 = arith.constant 1 : i32
    %30 = vector.broadcast %c1_i32 : i32 to vector<8x128xi32>
    %31 = arith.cmpi eq, %17, %30 : vector<8x128xi32>
    %32 = arith.select %31, %19, %18 : vector<8x128xi1>, vector<8x128xf32>
    %c0_i32_16 = arith.constant 0 : i32
    %33 = vector.broadcast %c0_i32_16 : i32 to vector<8x128xi32>
    %34 = arith.cmpi sge, %17, %33 : vector<8x128xi32>
    %35 = arith.extui %34 : vector<8x128xi1> to vector<8x128xi32>
    %36 = arith.sitofp %35 : vector<8x128xi32> to vector<8x128xf32>
    %37 = arith.subf %29, %32 : vector<8x128xf32>
    %38 = arith.mulf %37, %36 : vector<8x128xf32>
    %c0_17 = arith.constant 0 : index
    %c0_18 = arith.constant 0 : index
    %39 = vector.load %arg12[%c0_17, %c0_18] : memref<8x128xf32, #tpu.memory_space<vmem>>, vector<1x128xf32>
    %cst_19 = arith.constant dense<0.000000e+00> : vector<128xf32>
    %40 = vector.multi_reduction <add>, %16, %cst_19 [0] : vector<32x128xf32> to vector<128xf32>
    %41 = vector.shape_cast %40 : vector<128xf32> to vector<1x128xf32>
    %42 = arith.addf %39, %41 : vector<1x128xf32>
    %c0_20 = arith.constant 0 : index
    %c0_21 = arith.constant 0 : index
    %43 = vector.load %arg12[%c0_20, %c0_21] : memref<8x128xf32, #tpu.memory_space<vmem>>, vector<1x128xf32>
    tpu.vector_store %arg12[%c0_20, %c0_21], %42 {strides = array<i32>} : memref<8x128xf32, #tpu.memory_space<vmem>>, vector<1x128xf32>,
    %c1 = arith.constant 1 : index
    %c0_22 = arith.constant 0 : index
    %44 = vector.load %arg12[%c1, %c0_22] : memref<8x128xf32, #tpu.memory_space<vmem>>, vector<1x128xf32>
    %cst_23 = arith.constant dense<0.000000e+00> : vector<128xf32>
    %45 = vector.multi_reduction <add>, %36, %cst_23 [0] : vector<8x128xf32> to vector<128xf32>
    %46 = vector.shape_cast %45 : vector<128xf32> to vector<1x128xf32>
    %47 = arith.addf %44, %46 : vector<1x128xf32>
    %c1_24 = arith.constant 1 : index
    %c0_25 = arith.constant 0 : index
    %48 = vector.load %arg12[%c1_24, %c0_25] : memref<8x128xf32, #tpu.memory_space<vmem>>, vector<1x128xf32>
    tpu.vector_store %arg12[%c1_24, %c0_25], %47 {strides = array<i32>} : memref<8x128xf32, #tpu.memory_space<vmem>>, vector<1x128xf32>,
    %c2 = arith.constant 2 : index
    %c0_26 = arith.constant 0 : index
    %49 = vector.load %arg12[%c2, %c0_26] : memref<8x128xf32, #tpu.memory_space<vmem>>, vector<1x128xf32>
    %cst_27 = arith.constant dense<0.000000e+00> : vector<128xf32>
    %50 = vector.multi_reduction <add>, %38, %cst_27 [0] : vector<8x128xf32> to vector<128xf32>
    %51 = vector.shape_cast %50 : vector<128xf32> to vector<1x128xf32>
    %52 = arith.addf %49, %51 : vector<1x128xf32>
    %c2_28 = arith.constant 2 : index
    %c0_29 = arith.constant 0 : index
    %53 = vector.load %arg12[%c2_28, %c0_29] : memref<8x128xf32, #tpu.memory_space<vmem>>, vector<1x128xf32>
    tpu.vector_store %arg12[%c2_28, %c0_29], %52 {strides = array<i32>} : memref<8x128xf32, #tpu.memory_space<vmem>>, vector<1x128xf32>,
    %c1_i32_30 = arith.constant 1 : i32
    %54 = arith.cmpi eq, %arg0, %c1_i32_30 : i32
    %55 = arith.extui %54 : i1 to i32
    %c0_i32_31 = arith.constant 0 : i32
    %56 = arith.cmpi ne, %55, %c0_i32_31 : i32
    scf.if %56 {
      %c0_32 = arith.constant 0 : index
      %c0_33 = arith.constant 0 : index
      %57 = vector.load %arg12[%c0_32, %c0_33] : memref<8x128xf32, #tpu.memory_space<vmem>>, vector<1x128xf32>
      %58 = vector.shape_cast %57 : vector<1x128xf32> to vector<1x1x128xf32>
      %cst_34 = arith.constant dense<0.000000e+00> : vector<1xf32>
      %59 = vector.multi_reduction <add>, %58, %cst_34 [1, 2] : vector<1x1x128xf32> to vector<1xf32>
      %60 = vector.shape_cast %59 : vector<1xf32> to vector<1x1x1xf32>
      %61 = vector.extract %60[0, 0, 0] : f32 from vector<1x1x1xf32>
      %c1_35 = arith.constant 1 : index
      %c0_36 = arith.constant 0 : index
      %62 = vector.load %arg12[%c1_35, %c0_36] : memref<8x128xf32, #tpu.memory_space<vmem>>, vector<1x128xf32>
      %63 = vector.shape_cast %62 : vector<1x128xf32> to vector<1x1x128xf32>
      %cst_37 = arith.constant dense<0.000000e+00> : vector<1xf32>
      %64 = vector.multi_reduction <add>, %63, %cst_37 [1, 2] : vector<1x1x128xf32> to vector<1xf32>
      %65 = vector.shape_cast %64 : vector<1xf32> to vector<1x1x1xf32>
      %66 = vector.extract %65[0, 0, 0] : f32 from vector<1x1x1xf32>
      %c2_38 = arith.constant 2 : index
      %c0_39 = arith.constant 0 : index
      %67 = vector.load %arg12[%c2_38, %c0_39] : memref<8x128xf32, #tpu.memory_space<vmem>>, vector<1x128xf32>
      %68 = vector.shape_cast %67 : vector<1x128xf32> to vector<1x1x128xf32>
      %cst_40 = arith.constant dense<0.000000e+00> : vector<1xf32>
      %69 = vector.multi_reduction <add>, %68, %cst_40 [1, 2] : vector<1x1x128xf32> to vector<1xf32>
      %70 = vector.shape_cast %69 : vector<1xf32> to vector<1x1x1xf32>
      %71 = vector.extract %70[0, 0, 0] : f32 from vector<1x1x1xf32>
      %cst_41 = arith.constant 1.000000e+00 : f32
      %72 = arith.maximumf %66, %cst_41 : f32
      %73 = arith.divf %61, %72 : f32
      %74 = arith.divf %71, %72 : f32
      %c0_42 = arith.constant 0 : index
      %c0_43 = arith.constant 0 : index
      %75 = vector.load %arg10[%c0_42, %c0_43] : memref<64x1xi32, #tpu.memory_space<vmem>>, vector<64x1xi32>
      %c0_44 = arith.constant 0 : index
      %c0_45 = arith.constant 0 : index
      %76 = vector.load %arg7[%c0_44, %c0_45] : memref<64x32xf32, #tpu.memory_space<vmem>>, vector<64x32xf32>
      %c0_46 = arith.constant 0 : index
      %c0_47 = arith.constant 0 : index
      %77 = vector.load %arg8[%c0_46, %c0_47] : memref<64x4xf32, #tpu.memory_space<vmem>>, vector<64x4xf32>
      %78 = tpu.iota {dimensions = array<i32: 1>} : vector<64x32xi32>
      %c2_i32 = arith.constant 2 : i32
      %79 = vector.broadcast %c2_i32 : i32 to vector<64x32xi32>
      %80 = arith.shrsi %78, %79 : vector<64x32xi32>
      %81 = vector.broadcast %75 : vector<64x1xi32> to vector<64x32xi32>
      %82 = arith.cmpi eq, %80, %81 : vector<64x32xi32>
      %c0_i32_48 = arith.constant 0 : i32
      %83 = vector.broadcast %c0_i32_48 : i32 to vector<64x1xi32>
      %84 = arith.cmpi sgt, %75, %83 : vector<64x1xi32>
      %85 = vector.broadcast %84 : vector<64x1xi1> to vector<64x32xi1>
      %86 = arith.andi %82, %85 : vector<64x32xi1>
      %c3_i32 = arith.constant 3 : i32
      %87 = vector.broadcast %c3_i32 : i32 to vector<64x32xi32>
      %88 = arith.andi %78, %87 : vector<64x32xi32>
      %c0_i32_49 = arith.constant 0 : i32
      %89 = vector.broadcast %c0_i32_49 : i32 to vector<64x32xi32>
      %90 = arith.cmpi eq, %88, %89 : vector<64x32xi32>
      %91 = vector.extract_strided_slice %77 {offsets = [0, 0], sizes = [64, 1], strides = [1, 1]} : vector<64x4xf32> to vector<64x1xf32>
      %c1_i32_50 = arith.constant 1 : i32
      %92 = vector.broadcast %c1_i32_50 : i32 to vector<64x32xi32>
      %93 = arith.cmpi eq, %88, %92 : vector<64x32xi32>
      %94 = vector.extract_strided_slice %77 {offsets = [0, 1], sizes = [64, 1], strides = [1, 1]} : vector<64x4xf32> to vector<64x1xf32>
      %c2_i32_51 = arith.constant 2 : i32
      %95 = vector.broadcast %c2_i32_51 : i32 to vector<64x32xi32>
      %96 = arith.cmpi eq, %88, %95 : vector<64x32xi32>
      %97 = vector.extract_strided_slice %77 {offsets = [0, 2], sizes = [64, 1], strides = [1, 1]} : vector<64x4xf32> to vector<64x1xf32>
      %98 = vector.extract_strided_slice %77 {offsets = [0, 3], sizes = [64, 1], strides = [1, 1]} : vector<64x4xf32> to vector<64x1xf32>
      %99 = vector.shape_cast %97 : vector<64x1xf32> to vector<64x1xf32>
      %100 = vector.broadcast %99 : vector<64x1xf32> to vector<64x32xf32>
      %101 = vector.shape_cast %98 : vector<64x1xf32> to vector<64x1xf32>
      %102 = vector.broadcast %101 : vector<64x1xf32> to vector<64x32xf32>
      %103 = arith.select %96, %100, %102 : vector<64x32xi1>, vector<64x32xf32>
      %104 = vector.shape_cast %94 : vector<64x1xf32> to vector<64x1xf32>
      %105 = vector.broadcast %104 : vector<64x1xf32> to vector<64x32xf32>
      %106 = arith.select %93, %105, %103 : vector<64x32xi1>, vector<64x32xf32>
      %107 = vector.shape_cast %91 : vector<64x1xf32> to vector<64x1xf32>
      %108 = vector.broadcast %107 : vector<64x1xf32> to vector<64x32xf32>
      %109 = arith.select %90, %108, %106 : vector<64x32xi1>, vector<64x32xf32>
      %110 = arith.subf %76, %109 : vector<64x32xf32>
      %cst_52 = arith.constant 0.000000e+00 : f32
      %111 = vector.broadcast %cst_52 : f32 to vector<64x32xf32>
      %112 = arith.select %86, %110, %111 : vector<64x32xi1>, vector<64x32xf32>
      %113 = math.absf %112 : vector<64x32xf32>
      %cst_53 = arith.constant 1.000000e+00 : f32
      %114 = vector.broadcast %cst_53 : f32 to vector<64x32xf32>
      %115 = arith.cmpf olt, %113, %114 : vector<64x32xf32>
      %cst_54 = arith.constant 5.000000e-01 : f32
      %116 = vector.broadcast %cst_54 : f32 to vector<64x32xf32>
      %117 = arith.mulf %116, %112 : vector<64x32xf32>
      %118 = arith.mulf %117, %112 : vector<64x32xf32>
      %cst_55 = arith.constant 5.000000e-01 : f32
      %119 = vector.broadcast %cst_55 : f32 to vector<64x32xf32>
      %120 = arith.subf %113, %119 : vector<64x32xf32>
      %121 = arith.select %115, %118, %120 : vector<64x32xi1>, vector<64x32xf32>
      %122 = vector.shape_cast %121 : vector<64x32xf32> to vector<1x64x32xf32>
      %cst_56 = arith.constant dense<0.000000e+00> : vector<1xf32>
      %123 = vector.multi_reduction <add>, %122, %cst_56 [1, 2] : vector<1x64x32xf32> to vector<1xf32>
      %124 = vector.shape_cast %123 : vector<1xf32> to vector<1x1x1xf32>
      %125 = vector.extract %124[0, 0, 0] : f32 from vector<1x1x1xf32>
      %c0_i32_57 = arith.constant 0 : i32
      %126 = vector.broadcast %c0_i32_57 : i32 to vector<64x1xi32>
      %127 = arith.cmpi sge, %75, %126 : vector<64x1xi32>
      %128 = arith.extui %127 : vector<64x1xi1> to vector<64x1xi32>
      %129 = arith.sitofp %128 : vector<64x1xi32> to vector<64x1xf32>
      %130 = vector.shape_cast %129 : vector<64x1xf32> to vector<1x64x1xf32>
      %cst_58 = arith.constant dense<0.000000e+00> : vector<1xf32>
      %131 = vector.multi_reduction <add>, %130, %cst_58 [1, 2] : vector<1x64x1xf32> to vector<1xf32>
      %132 = vector.shape_cast %131 : vector<1xf32> to vector<1x1x1xf32>
      %133 = vector.extract %132[0, 0, 0] : f32 from vector<1x1x1xf32>
      %cst_59 = arith.constant 1.000000e+00 : f32
      %134 = arith.maximumf %133, %cst_59 : f32
      %135 = arith.divf %125, %134 : f32
      %c0_60 = arith.constant 0 : index
      %c0_61 = arith.constant 0 : index
      %136 = vector.load %arg9[%c0_60, %c0_61] : memref<64x8xf32, #tpu.memory_space<vmem>>, vector<64x8xf32>
      %cst_62 = arith.constant dense<0xFF800000> : vector<64xf32>
      %137 = vector.multi_reduction <maximumf>, %136, %cst_62 [1] : vector<64x8xf32> to vector<64xf32>
      %138 = vector.shape_cast %137 : vector<64xf32> to vector<64x1xf32>
      %139 = vector.broadcast %138 : vector<64x1xf32> to vector<64x8xf32>
      %140 = arith.subf %136, %139 : vector<64x8xf32>
      %141 = math.exp %140 : vector<64x8xf32>
      %cst_63 = arith.constant dense<0.000000e+00> : vector<64xf32>
      %142 = vector.multi_reduction <add>, %141, %cst_63 [1] : vector<64x8xf32> to vector<64xf32>
      %143 = vector.shape_cast %142 : vector<64xf32> to vector<64x1xf32>
      %144 = math.log %143 : vector<64x1xf32>
      %145 = arith.addf %138, %144 : vector<64x1xf32>
      %146 = tpu.iota {dimensions = array<i32: 1>} : vector<64x8xi32>
      %147 = vector.broadcast %75 : vector<64x1xi32> to vector<64x8xi32>
      %148 = arith.cmpi eq, %146, %147 : vector<64x8xi32>
      %cst_64 = arith.constant 0.000000e+00 : f32
      %149 = vector.broadcast %cst_64 : f32 to vector<64x8xf32>
      %150 = arith.select %148, %136, %149 : vector<64x8xi1>, vector<64x8xf32>
      %cst_65 = arith.constant dense<0.000000e+00> : vector<64xf32>
      %151 = vector.multi_reduction <add>, %150, %cst_65 [1] : vector<64x8xf32> to vector<64xf32>
      %152 = vector.shape_cast %151 : vector<64xf32> to vector<64x1xf32>
      %153 = arith.subf %145, %152 : vector<64x1xf32>
      %154 = vector.shape_cast %153 : vector<64x1xf32> to vector<1x64x1xf32>
      %cst_66 = arith.constant dense<0.000000e+00> : vector<1xf32>
      %155 = vector.multi_reduction <add>, %154, %cst_66 [1, 2] : vector<1x64x1xf32> to vector<1xf32>
      %156 = vector.shape_cast %155 : vector<1xf32> to vector<1x1x1xf32>
      %157 = vector.extract %156[0, 0, 0] : f32 from vector<1x1x1xf32>
      %cst_67 = arith.constant 6.400000e+01 : f32
      %158 = arith.divf %157, %cst_67 : f32
      %159 = arith.addf %73, %74 : f32
      %160 = arith.addf %159, %135 : f32
      %161 = arith.addf %160, %158 : f32
      %c0_68 = arith.constant 0 : index
      %c0_69 = arith.constant 0 : index
      %162 = memref.load %arg11[%c0_68, %c0_69] : memref<1x8xf32, #tpu.memory_space<smem>>
      memref.store %73, %arg11[%c0_68, %c0_69] : memref<1x8xf32, #tpu.memory_space<smem>>
      %c0_70 = arith.constant 0 : index
      %c1_71 = arith.constant 1 : index
      %163 = memref.load %arg11[%c0_70, %c1_71] : memref<1x8xf32, #tpu.memory_space<smem>>
      memref.store %74, %arg11[%c0_70, %c1_71] : memref<1x8xf32, #tpu.memory_space<smem>>
      %c0_72 = arith.constant 0 : index
      %c2_73 = arith.constant 2 : index
      %164 = memref.load %arg11[%c0_72, %c2_73] : memref<1x8xf32, #tpu.memory_space<smem>>
      memref.store %135, %arg11[%c0_72, %c2_73] : memref<1x8xf32, #tpu.memory_space<smem>>
      %c0_74 = arith.constant 0 : index
      %c3 = arith.constant 3 : index
      %165 = memref.load %arg11[%c0_74, %c3] : memref<1x8xf32, #tpu.memory_space<smem>>
      memref.store %158, %arg11[%c0_74, %c3] : memref<1x8xf32, #tpu.memory_space<smem>>
      %c0_75 = arith.constant 0 : index
      %c4 = arith.constant 4 : index
      %166 = memref.load %arg11[%c0_75, %c4] : memref<1x8xf32, #tpu.memory_space<smem>>
      memref.store %161, %arg11[%c0_75, %c4] : memref<1x8xf32, #tpu.memory_space<smem>>
      %cst_76 = arith.constant 0.000000e+00 : f32
      %c0_77 = arith.constant 0 : index
      %c5 = arith.constant 5 : index
      %167 = memref.load %arg11[%c0_77, %c5] : memref<1x8xf32, #tpu.memory_space<smem>>
      memref.store %cst_76, %arg11[%c0_77, %c5] : memref<1x8xf32, #tpu.memory_space<smem>>
      %cst_78 = arith.constant 0.000000e+00 : f32
      %c0_79 = arith.constant 0 : index
      %c6 = arith.constant 6 : index
      %168 = memref.load %arg11[%c0_79, %c6] : memref<1x8xf32, #tpu.memory_space<smem>>
      memref.store %cst_78, %arg11[%c0_79, %c6] : memref<1x8xf32, #tpu.memory_space<smem>>
      %cst_80 = arith.constant 0.000000e+00 : f32
      %c0_81 = arith.constant 0 : index
      %c7 = arith.constant 7 : index
      %169 = memref.load %arg11[%c0_81, %c7] : memref<1x8xf32, #tpu.memory_space<smem>>
      memref.store %cst_80, %arg11[%c0_81, %c7] : memref<1x8xf32, #tpu.memory_space<smem>>
    } else {
    }
    return
  }
  func.func @transform_0(%arg0: i32) -> (i32, i32) {
    %c0_i32 = arith.constant 0 : i32
    %c0_i32_0 = arith.constant 0 : i32
    return %arg0, %c0_i32 : i32, i32
  }
  func.func @transform_1(%arg0: i32) -> (i32, i32) {
    %c0_i32 = arith.constant 0 : i32
    %c0_i32_0 = arith.constant 0 : i32
    return %arg0, %c0_i32 : i32, i32
  }
  func.func @transform_2(%arg0: i32) -> (i32, i32) {
    %c0_i32 = arith.constant 0 : i32
    %c0_i32_0 = arith.constant 0 : i32
    return %arg0, %c0_i32 : i32, i32
  }
  func.func @transform_3(%arg0: i32) -> (i32, i32) {
    %c0_i32 = arith.constant 0 : i32
    %c0_i32_0 = arith.constant 0 : i32
    return %arg0, %c0_i32 : i32, i32
  }
  func.func @transform_4(%arg0: i32) -> (i32, i32) {
    %c0_i32 = arith.constant 0 : i32
    %c0_i32_0 = arith.constant 0 : i32
    return %arg0, %c0_i32 : i32, i32
  }
  func.func @transform_5(%arg0: i32) -> (i32, i32) {
    %c0_i32 = arith.constant 0 : i32
    %c0_i32_0 = arith.constant 0 : i32
    return %arg0, %c0_i32 : i32, i32
  }
  func.func @transform_6(%arg0: i32) -> (i32, i32) {
    %c0_i32 = arith.constant 0 : i32
    %c0_i32_0 = arith.constant 0 : i32
    %c0_i32_1 = arith.constant 0 : i32
    return %c0_i32, %c0_i32_0 : i32, i32
  }
  func.func @transform_7(%arg0: i32) -> (i32, i32) {
    %c0_i32 = arith.constant 0 : i32
    %c0_i32_0 = arith.constant 0 : i32
    %c0_i32_1 = arith.constant 0 : i32
    return %c0_i32, %c0_i32_0 : i32, i32
  }
  func.func @transform_8(%arg0: i32) -> (i32, i32) {
    %c0_i32 = arith.constant 0 : i32
    %c0_i32_0 = arith.constant 0 : i32
    %c0_i32_1 = arith.constant 0 : i32
    return %c0_i32, %c0_i32_0 : i32, i32
  }
  func.func @transform_9(%arg0: i32) -> (i32, i32) {
    %c0_i32 = arith.constant 0 : i32
    %c0_i32_0 = arith.constant 0 : i32
    %c0_i32_1 = arith.constant 0 : i32
    return %c0_i32, %c0_i32_0 : i32, i32
  }
  func.func @transform_10(%arg0: i32) -> (i32, i32) {
    %c0_i32 = arith.constant 0 : i32
    %c0_i32_0 = arith.constant 0 : i32
    %c0_i32_1 = arith.constant 0 : i32
    return %c0_i32, %c0_i32_0 : i32, i32
  }
}

</mosaic_0001>

<bundles_post_ra>
// kernel: tpu_custom_call.1
= control target key start
LH: loop header
LB: loop body
LE: loop exit
PB: predicated region body
PF: predicated region fallthrough
CT: control target
= control target key end

     0   :  { %15 = vsyncpa [#allocation4], 0  ;;  %s1550_s13 = smov 0   ;;  %s2121_s0 = inlined_call_operand.vmem [shape: f32[64,128], index: 0, kind: input, shape index: {}]   ;;  %s2122_s1 = inlined_call_operand.vmem [shape: f32[64,128], index: 1, kind: input, shape index: {}]   ;;  %s2123_s2 = inlined_call_operand.vmem [shape: f32[64,128], index: 2, kind: input, shape index: {}]   ;;  %s2124_s3 = inlined_call_operand.vmem [shape: f32[16,128], index: 3, kind: input, shape index: {}]   ;;  %s2125_s4 = inlined_call_operand.vmem [shape: f32[16,128], index: 4, kind: input, shape index: {}]   ;;  %s2126_s5 = inlined_call_operand.vmem [shape: s32[16,128], index: 5, kind: input, shape index: {}]   ;;  %s2127_s6 = inlined_call_operand.vmem [shape: f32[64,32], index: 6, kind: input, shape index: {}]   ;;  %s2128_s7 = inlined_call_operand.vmem [shape: f32[64,4], index: 7, kind: input, shape index: {}]   ;;  %s2129_s8 = inlined_call_operand.vmem [shape: f32[64,8], index: 8, kind: input, shape index: {}]   ;;  %s2130_s9 = inlined_call_operand.vmem [shape: s32[64,1], index: 9, kind: input, shape index: {}]   ;;  %s2131_s10 = inlined_call_operand.hbm [shape: f32[1,8], index: 10, kind: output, shape index: {}]  }
   0x1 LB: > { %2133 = sst [smem:[#allocation6_spill]] %s1483_s13  ;;  %s1556_s14 = sadd.s32 4294967295, %s1483_s13   ;;  %s1483_s13 = sphi %s1550_s13, %s21_s13  }
   0x2   : > { %p1318_p0 = scmp.ge.s32.totalorder %s1483_s13, 1  ;;  %p358_p1 = scmp.lt.s32.totalorder %s1483_s13, 3 }
   0x4   : > { %p359_p2 = pnand %p1318_p0, %p358_p1 }
   0x5   : > { %s1319_s15 = sshll.u32 (!%p359_p2), %s1556_s14, 2  ;;  %p431_p3 = scmp.lt.s32.totalorder (!%p359_p2), %s1556_s14, 1 }
   0x6   : > { %362 = sbr.rel (%p359_p2) target bundleno = 654 (0x28e), region = 60  ;;  %p414_p4 = scmp.lt.s32.totalorder (!%p359_p2), %s1319_s15, 7 }
   0x7   : > { %p1328_p5 = scmp.ne.s32.totalorder (!%p359_p2), %s1556_s14, 0 }
   0xd   : > { %s432_s16 = scalar_select %p431_p3, %s1556_s14, 1 }
   0xe   : > { %s2146_s15 = smov (!%p414_p4, %s1319_s15), 7  ;;  %446 = sbr.rel (%p1328_p5) target bundleno = 21 (0x15), region = 64 }
   0xf   : > { %s1563_s17 = sshll.u32 %s432_s16, 3  ;;  %s1320_s18 = sshll.u32 %s2146_s15, 3  ;;  %v1485_v0 = vmov (!%p1328_p5), 0.0  }
  0x10   : > { %s434_s21 = scalar_lea.vmem %s2124_s3, %s1563_s17  ;;  %s417_s24 = scalar_lea.vmem %s2121_s0, %s1320_s18  ;;  %447 = vst [vmem:[#allocation2] sm:$0xff] (!%p1328_p5), %v1485_v0 }
  0x11   : > { %s423_s27 = scalar_lea.vmem %s2122_s1, %s1320_s18  ;;  %s429_s30 = scalar_lea.vmem %s2123_s2, %s1320_s18 }
  0x12   : > { %s438_s15 = scalar_lea.vmem %s2125_s4, %s1563_s17  ;;  %s442_s19 = scalar_lea.vmem %s2126_s5, %s1563_s17 }
  0x15 PF: > { %v448_v1 = vld [vmem:[%s417_s24] sm:$0xff]  ;;  %v449_v2 = vld [vmem:[%s417_s24 + $0x8] sm:$0xff]  ;;  %v450_v3 = vld [vmem:[%s417_s24 + $0x10] sm:$0xff]  ;;  %v1486_v44 = vmov 0.0   ;;  %p1334_p6 = scmp.ne.s32.totalorder %s1556_s14, 1 }
  0x16   : > { %v451_v4 = vld [vmem:[%s417_s24 + $0x18] sm:$0xff]  ;;  %v452_v5 = vld [vmem:[%s423_s27] sm:$0xff]  ;;  %v453_v6 = vld [vmem:[%s423_s27 + $0x8] sm:$0xff]  ;;  %vm1019_vm6 = vcmask (!%p1334_p6), 64512   ;;  %vm981_vm8 = vcmask (!%p1334_p6), 7168   ;;  %s1493_s12 = smov (!%p1334_p6), 0.0  }
  0x17   : > { %v454_v7 = vld [vmem:[%s423_s27 + $0x10] sm:$0xff]  ;;  %v455_v8 = vld [vmem:[%s423_s27 + $0x18] sm:$0xff]  ;;  %v456_v9 = vld [vmem:[%s429_s30] sm:$0xff]  ;;  %v460_v10 = vsub.f32 %v448_v1, %v452_v5  ;;  %v461_v11 = vsub.f32 %v449_v2, %v453_v6  ;;  %1205 = sst [smem:[#allocation3 + $0x5]] (!%p1334_p6), %s1493_s12 }
  0x18   : > { %v457_v12 = vld [vmem:[%s429_s30 + $0x8] sm:$0xff]  ;;  %v458_v13 = vld [vmem:[%s429_s30 + $0x10] sm:$0xff]  ;;  %v459_v14 = vld [vmem:[%s429_s30 + $0x18] sm:$0xff]  ;;  %v462_v15 = vsub.f32 %v450_v3, %v454_v7  ;;  %v463_v16 = vsub.f32 %v451_v4, %v455_v8  ;;  %s1492_s30 = smov (!%p1334_p6), 1.0   ;;  %1207 = sst [smem:[#allocation3 + $0x6]] (!%p1334_p6), %s1493_s12 }
  0x19   : > { %v464_v17 = vmul.f32 %v460_v10, %v456_v9  ;;  %v465_v18 = vmul.f32 %v461_v11, %v457_v12  ;;  %v1587_v21 = vld [vmem:[%s442_s19] sm:$0xff]  ;;  %v1663_v36 = vld [vmem:[%s2129_s8 + $0x28] sm:$0xff] (!%p1334_p6)  ;;  %1209 = sst [smem:[#allocation3 + $0x7]] (!%p1334_p6), %s1493_s12 }
  0x1a   : > { %v466_v19 = vmul.f32 %v462_v15, %v458_v13  ;;  %v467_v20 = vmul.f32 %v463_v16, %v459_v14  ;;  %vm507_vm0 = vcmp.ge.s32.totalorder %v1587_v21, 0  ;;  %v493_v32 = vld [vmem:[%s434_s21] sm:$0xff]  ;;  %vm505_vm5 = vcmp.eq.s32.totalorder %v1587_v21, 1  ;;  %v1629_v21 = vld [vmem:[%s2129_s8 + $0x10] sm:$0xff] (!%p1334_p6) }
  0x1b   : > { %v468_v22 = vand.u32 2147483647, %v464_v17  ;;  %v469_v23 = vand.u32 2147483647, %v465_v18  ;;  %v476_v24 = vmul.f32 4.5, %v464_v17  ;;  %v477_v25 = vmul.f32 4.5, %v465_v18 }
  0x1c   : > { %v470_v26 = vand.u32 2147483647, %v466_v19  ;;  %v471_v27 = vand.u32 2147483647, %v467_v20  ;;  %v478_v28 = vmul.f32 4.5, %v466_v19  ;;  %v479_v29 = vmul.f32 4.5, %v467_v20 }
  0x1d   : > { %v480_v30 = vmul.f32 %v476_v24, %v464_v17  ;;  %v481_v31 = vmul.f32 %v477_v25, %v465_v18  ;;  %v494_v33 = vld [vmem:[%s438_s15] sm:$0xff]  ;;  %vm1600_vm1 = vcmp.lt.f32.partialorder %v468_v22, 0.11111111  ;;  %vm1604_vm2 = vcmp.lt.f32.partialorder %v469_v23, 0.11111111 }
  0x1e   : > { %vm1608_vm3 = vcmp.lt.f32.partialorder %v470_v26, 0.11111111  ;;  %v482_v37 = vmul.f32 %v478_v28, %v466_v19  ;;  %v483_v38 = vmul.f32 %v479_v29, %v467_v20  ;;  %v1329_v39 = vadd.f32 -0.055555556, %v468_v22  ;;  %v524_v0 = vld [vmem:[#allocation2 + $0x1] sm:$0x1] }
  0x1f   : > { %v1330_v40 = vadd.f32 -0.055555556, %v469_v23  ;;  %v1331_v41 = vadd.f32 -0.055555556, %v470_v26  ;;  %vm1612_vm4 = vcmp.lt.f32.partialorder %v471_v27, 0.11111111  ;;  %v496_v46 = vsub.f32 %v493_v32, %v494_v33 }
  0x20   : > { %v1332_v43 = vadd.f32 -0.055555556, %v471_v27  ;;  %v1333_v45 = vsel %vm507_vm0, 1.0, %v1486_v44  ;;  %v488_v47 = vsel %vm1600_vm1, %v480_v30, %v1329_v39  ;;  %v512_v6 = vld [vmem:[#allocation2] sm:$0x1]  ;;  %v495_v11 = vmax.f32 %v493_v32, %v494_v33  ;;  %v1639_v28 = vld [vmem:[%s2129_s8 + $0x18] sm:$0xff] (!%p1334_p6) }
  0x21   : > { %v489_v48 = vsel %vm1604_vm2, %v481_v31, %v1330_v40  ;;  %v490_v49 = vsel %vm1608_vm3, %v482_v37, %v1331_v41  ;;  %v525_v50 = vrot.slane %v1333_v45, 4  ;;  %v497_v52 = vand.u32 2147483647, %v496_v46  ;;  %v533_v24 = vld [vmem:[#allocation2 + $0x2] sm:$0x1]  ;;  %v1648_v31 = vld [vmem:[%s2129_s8 + $0x8] sm:$0xff] (!%p1334_p6) }
  0x22   : > { %v513_v51 = vadd.f32 %v489_v48, %v488_v47  ;;  %v491_v53 = vsel %vm1612_vm4, %v483_v38, %v1332_v43  ;;  %v506_v14 = vsel %vm505_vm5, %v494_v33, %v493_v32  ;;  %v1634_v27 = vld [vmem:[%s2129_s8] sm:$0xff] (!%p1334_p6)  ;;  %v1026_v29 = vsel (!%p1334_p6), %vm1019_vm6, %v1629_v21, -inf  ;;  %v1654_v33 = vld [vmem:[%s2130_s9 + $0x8] sm:$0xff] (!%p1334_p6)  ;;  %v1675_v41 = vld [vmem:[%s2130_s9 + $0x10] sm:$0xff] (!%p1334_p6) }
  0x23   : > { %v526_v54 = vadd.f32 %v1333_v45, %v525_v50  ;;  %v498_v56 = vsub.f32 0.0, %v497_v52  ;;  %v1020_v30 = vsel (!%p1334_p6), %vm1019_vm6, %v1634_v27, -inf  ;;  %v1487_v32 = vmov (!%p1334_p6), 0   ;;  %1027 = vmax.xlane.f32.xlu1 (!%p1334_p6), %v1026_v29  ;;  %v1669_v37 = vld [vmem:[%s2129_s8 + $0x20] sm:$0xff] (!%p1334_p6)  ;;  %v1693_v47 = vld [vmem:[%s2129_s8 + $0x38] sm:$0xff] (!%p1334_p6)  ;;  %v1698_v48 = vld [vmem:[%s2129_s8 + $0x30] sm:$0xff] (!%p1334_p6) }
  0x24   : > { %v514_v55 = vadd.f32 %v513_v51, %v490_v49  ;;  %1399 = vset.pattern.permute.xlu1 (!%p1334_p6), %v1487_v32  ;;  %1021 = vmax.xlane.f32.xlu0 (!%p1334_p6), %v1020_v30  ;;  %v1029_v34 = vsel (!%p1334_p6), %vm1019_vm6, %v1639_v28, -inf  ;;  %v1023_v35 = vsel (!%p1334_p6), %vm1019_vm6, %v1648_v31, -inf  ;;  %vm958_vm7 = vcmp.ge.s32.totalorder (!%p1334_p6), %v1654_v33, 0  ;;  %v1683_v43 = vld [vmem:[%s2130_s9] sm:$0xff] (!%p1334_p6) }
  0x25   : > { %v527_v57 = vrot.slane %v526_v54, 2  ;;  %v499_v59 = vmul.f32 1.442695, %v498_v56  ;;  %v1488_v38 = vmov (!%p1334_p6), 0.0   ;;  %v1489_v40 = vmov (!%p1334_p6), 2   ;;  %v607_v56 = vld [vmem:[%s2128_s7 + $0x10] sm:$0xff] (!%p1334_p6) }
  0x26   : > { %v515_v58 = vadd.f32 %v514_v55, %v491_v53  ;;  %v1344_v39 = vsel (!%p1334_p6), %vm958_vm7, 1.0, %v1488_v38  ;;  %1404 = vset.pattern.permute.xlu0 (!%p1334_p6), %v1489_v40  ;;  %v1035_v42 = vsel (!%p1334_p6), %vm1019_vm6, %v1663_v36, -inf  ;;  %vm959_vm9 = vcmp.ge.s32.totalorder (!%p1334_p6), %v1675_v41, 0 }
  0x27   : > { %v528_v60 = vadd.f32 %v527_v57, %v526_v54  ;;  %1395 = vpow2.f32 %v499_v59  ;;  %1030 = vmax.xlane.f32.xlu1 (!%p1334_p6), %v1029_v34  ;;  %v1032_v44 = vsel (!%p1334_p6), %vm1019_vm6, %v1669_v37, -inf  ;;  %v1345_v46 = vsel (!%p1334_p6), %vm959_vm9, 1.0, %v1488_v38  ;;  %v605_v57 = vld [vmem:[%s2128_s7] sm:$0xff] (!%p1334_p6)  ;;  %v606_v59 = vld [vmem:[%s2128_s7 + $0x8] sm:$0xff] (!%p1334_p6) }
  0x28   : > { %v516_v61 = vrot.slane %v515_v58, 4  ;;  %1024 = vmax.xlane.f32.xlu0 (!%p1334_p6), %v1023_v35  ;;  %vm957_vm10 = vcmp.ge.s32.totalorder (!%p1334_p6), %v1683_v43, 0  ;;  %v985_v50 = vsel (!%p1334_p6), %vm981_vm8, %v1345_v46, 0.0  ;;  %v1041_v53 = vsel (!%p1334_p6), %vm1019_vm6, %v1693_v47, -inf }
  0x29   : > { %v529_v62 = vrot.slane %v528_v60, 1  ;;  %v1343_v49 = vsel (!%p1334_p6), %vm957_vm10, 1.0, %v1488_v38  ;;  %v1038_v54 = vsel (!%p1334_p6), %vm1019_vm6, %v1698_v48, -inf  ;;  %vm649_vm11 = vcmp.gt.s32.totalorder (!%p1334_p6), %v1654_v33, 0 }
  0x2a   : > { %v517_v63 = vadd.f32 %v516_v61, %v515_v58  ;;  %v982_v51 = vsel (!%p1334_p6), %vm981_vm8, %v1343_v49, 0.0  ;;  %v1719_v58 = vld [vmem:[%s2128_s7 + $0x18] sm:$0xff] (!%p1334_p6)  ;;  %v1490_v61 = vmov (!%p1334_p6), 3   ;;  %vm648_vm12 = vcmp.gt.s32.totalorder (!%p1334_p6), %v1683_v43, 0 }
  0x2b   : > { %v530_v1 = vadd.f32 %v529_v62, %v528_v60  ;;  %1036 = vmax.xlane.f32.xlu1 (!%p1334_p6), %v1035_v42  ;;  %v1728_v60 = vld [vmem:[%s2128_s7 + $0x20] sm:$0xff] (!%p1334_p6)  ;;  %v1735_v62 = vld [vmem:[%s2128_s7 + $0x28] sm:$0xff] (!%p1334_p6)  ;;  %vm650_vm15 = vcmp.gt.s32.totalorder (!%p1334_p6), %v1675_v41, 0  ;;  %vm547_vm1 = vcmask (!%p1334_p6), 1040384  }
  0x2c   : > { %v518_v2 = vrot.slane %v517_v63, 2  ;;  %1033 = vmax.xlane.f32.xlu0 (!%p1334_p6), %v1032_v44 }
  0x2d   : > { %v531_v3 = vadd.f32 %v530_v1, %v524_v0  ;;  %v1748_v0 = vld [vmem:[%s2128_s7 + $0x38] sm:$0xff] (!%p1334_p6)  ;;  %v1491_v1 = vmov (!%p1334_p6), 1  }
  0x2e   : > { %v519_v4 = vadd.f32 %v518_v2, %v517_v63  ;;  %v1741_v63 = vld [vmem:[%s2128_s7 + $0x30] sm:$0xff] (!%p1334_p6)  ;;  %v657_v2 = vsel (!%p1334_p6), %vm649_vm11, 1, %v1487_v32 }
  0x2f   : > { %532 = vst [vmem:[#allocation2 + $0x1] sm:$0x1] %v531_v3  ;;  %1042 = vmax.xlane.f32.xlu1 (!%p1334_p6), %v1041_v53  ;;  %v1761_v3 = vld [vmem:[%s2130_s9 + $0x20] sm:$0xff] (!%p1334_p6) }
  0x30   : > { %v520_v5 = vrot.slane %v519_v4, 1  ;;  %1039 = vmax.xlane.f32.xlu0 (!%p1334_p6), %v1038_v54  ;;  %vm652_vm2 = vcmp.gt.s32.totalorder (!%p1334_p6), %v1761_v3, 0 }
  0x31   : > { %v1396_v7 = vpop.eup %1395 }
  0x32   : > { %v521_v8 = vadd.f32 %v520_v5, %v519_v4  ;;  %v501_v9 = vadd.f32 1.0, %v1396_v7  ;;  %v1768_v4 = vld [vmem:[%s2130_s9 + $0x18] sm:$0xff] (!%p1334_p6)  ;;  %v1773_v5 = vld [vmem:[%s2130_s9 + $0x28] sm:$0xff] (!%p1334_p6)  ;;  %v656_v7 = vsel (!%p1334_p6), %vm648_vm12, 1, %v1487_v32  ;;  %vm961_vm12 = vcmp.ge.s32.totalorder (!%p1334_p6), %v1761_v3, 0 }
  0x33   : > { %vm651_vm0 = vcmp.gt.s32.totalorder (!%p1334_p6), %v1768_v4, 0  ;;  %vm653_vm3 = vcmp.gt.s32.totalorder (!%p1334_p6), %v1773_v5, 0  ;;  %vm960_vm11 = vcmp.ge.s32.totalorder (!%p1334_p6), %v1768_v4, 0 }
  0x34   : > { %v522_v10 = vadd.f32 %v521_v8, %v512_v6  ;;  %1397 = vlog2.f32 %v501_v9  ;;  %v1781_v6 = vld [vmem:[%s2130_s9 + $0x30] sm:$0xff] (!%p1334_p6)  ;;  %v1788_v8 = vld [vmem:[%s2130_s9 + $0x38] sm:$0xff] (!%p1334_p6) }
  0x35   : > { %vm654_vm13 = vcmp.gt.s32.totalorder (!%p1334_p6), %v1781_v6, 0  ;;  %vm655_vm14 = vcmp.gt.s32.totalorder (!%p1334_p6), %v1788_v8, 0 }
  0x36   : > { %523 = vst [vmem:[#allocation2] sm:$0x1] %v522_v10  ;;  %v662_v9 = vsel (!%p1334_p6), %vm654_vm13, 1, %v1487_v32  ;;  %v663_v10 = vsel (!%p1334_p6), %vm655_vm14, 1, %v1487_v32 }
  0x3e   : > { %v1398_v12 = vpop.eup %1397 }
  0x3f   : > { %v503_v13 = vmul.f32 0.6931472, %v1398_v12  ;;  %v659_v12 = vsel (!%p1334_p6), %vm651_vm0, 1, %v1487_v32  ;;  %vm962_vm0 = vcmp.ge.s32.totalorder (!%p1334_p6), %v1773_v5, 0 }
  0x40   : > { %620 = vperm.xlu1 (!%p1334_p6), %1399, %v1654_v33   ;;  %v661_v33 = vsel (!%p1334_p6), %vm653_vm3, 1, %v1487_v32  ;;  %vm963_vm3 = vcmp.ge.s32.totalorder (!%p1334_p6), %v1781_v6, 0 }
  0x41   : > { %v504_v15 = vadd.f32 %v503_v13, %v495_v11  ;;  %v658_v11 = vsel (!%p1334_p6), %vm650_vm15, 1, %v1487_v32  ;;  %v558_v13 = vld [vmem:[#allocation2 + $0x1] sm:$0x1] (!%p1334_p6) }
  0x43   : > { %v510_v16 = vsub.f32 %v504_v15, %v506_v14  ;;  %v559_v14 = vsel (!%p1334_p6), %vm547_vm1, %v558_v13, 0.0  ;;  %v660_v15 = vsel (!%p1334_p6), %vm652_vm2, 1, %v1487_v32 }
  0x44   : > { %1400 = vset.pattern.permute.xlu1 (!%p1334_p6), %v1489_v40 }
  0x45   : > { %v511_v17 = vmul.f32 %v1333_v45, %v510_v16  ;;  %v983_v45 = vsel (!%p1334_p6), %vm981_vm8, %v1344_v39, 0.0  ;;  %710 = vperm.xlu1 (!%p1334_p6), %1400, %v605_v57  }
  0x46   : > { %v984_v52 = vadd.f32 (!%p1334_p6), %v983_v45, %v982_v51  ;;  %720 = vperm.xlu0 (!%p1334_p6), %1404, %v607_v56  }
  0x47   : > { %v534_v18 = vrot.slane %v511_v17, 4 }
  0x48   : > { %v1707_v55 = vadd.f32 (!%p1334_p6), %v985_v50, %v984_v52 }
  0x49   : > { %v535_v19 = vadd.f32 %v534_v18, %v511_v17  ;;  %715 = vperm.xlu1 (!%p1334_p6), %1400, %v606_v59  }
  0x4a   : > { %725 = vperm.xlu0 (!%p1334_p6), %1404, %v1719_v58  }
  0x4b   : > { %v536_v20 = vrot.slane %v535_v19, 2 }
  0x4d   : > { %v537_v22 = vadd.f32 %v536_v20, %v535_v19  ;;  %1401 = vset.pattern.permute.xlu1 (!%p1334_p6), %v1490_v61 }
  0x4e   : > { %730 = vperm.xlu0 (!%p1334_p6), %1404, %v1728_v60   ;;  %749 = vperm.xlu1 (!%p1334_p6), %1401, %v605_v57  }
  0x4f   : > { %v538_v23 = vrot.slane %v537_v22, 1  ;;  %545 = sbr.rel (%p1334_p6) target bundleno = 639 (0x27f), region = 68 }
  0x51   : > { %v539_v25 = vadd.f32 %v538_v23, %v537_v22 }
  0x52   : > { %735 = vperm.xlu0 (!%p1334_p6), %1404, %v1735_v62   ;;  %753 = vperm.xlu1 (!%p1334_p6), %1401, %v606_v59  }
  0x53   : > { %v540_v26 = vadd.f32 %v539_v25, %v533_v24 }
  0x55   : > { %541 = vst [vmem:[#allocation2 + $0x2] sm:$0x1] %v540_v26 }
  0x56   : > { %740 = vperm.xlu0 %1404, %v1741_v63   ;;  %1402 = vset.pattern.permute.xlu1 %v1487_v32 }
  0x57   : > { %623 = vperm.xlu1 %1402, %v1675_v41  }
  0x5a   : > { %745 = vperm.xlu0 %1404, %v1748_v0  }
  0x5b   : > { %1403 = vset.pattern.permute.xlu1 %v1491_v1 }
  0x5c   : > { %789 = vperm.xlu1 %1403, %v605_v57  }
  0x5e   : > { %1420 = vset.pattern.permute.xlu0 %v1487_v32 }
  0x5f   : > { %617 = vperm.xlu0 %1420, %v1683_v43   ;;  %v613_v43 = vlaneseq }
  0x60   : > { %793 = vperm.xlu1 %1403, %v606_v59  }
  0x61   : > { %v1855_v50 = vand.u32 127, %v613_v43 }
  0x63   : > { %833 = vperm.xlu0 %1420, %v606_v59   ;;  %v1860_v52 = vand.u32 3, %v1855_v50 }
  0x64   : > { %1405 = vset.pattern.permute.xlu1 %v1490_v61 }
  0x65   : > { %757 = vperm.xlu1 %1405, %v607_v56   ;;  %vm707_vm4 = vcmp.eq.s32.totalorder %v1860_v52, 2  ;;  %vm706_vm5 = vcmp.eq.s32.totalorder %v1860_v52, 1  ;;  %vm705_vm10 = vcmp.eq.s32.totalorder %v1860_v52, 0 }
  0x67   : > { %668 = vperm.xlu0 %1420, %v657_v2  }
  0x69   : > { %1406 = vset.pattern.permute.xlu1 %v1487_v32 }
  0x6a   : > { %829 = vperm.xlu1 %1406, %v605_v57  }
  0x6b   : > { %629 = vperm.xlu0 %1420, %v1761_v3  }
  0x6e   : > { %626 = vperm.xlu1 %1406, %v1768_v4  }
  0x6f   : > { %632 = vperm.xlu0 %1420, %v1773_v5  }
  0x72   : > { %665 = vperm.xlu1 %1406, %v656_v7  }
  0x73   : > { %635 = vperm.xlu0 %1420, %v1781_v6   ;;  %v597_v6 = vld [vmem:[%s2127_s6] sm:$0xff] }
  0x76   : > { %1407 = vset.pattern.permute.xlu1 %v1491_v1 }
  0x77   : > { %638 = vperm.xlu0 %1420, %v1788_v8   ;;  %797 = vperm.xlu1 %1407, %v607_v56  }
  0x7b   : > { %683 = vperm.xlu0 %1420, %v662_v9   ;;  %1408 = vset.pattern.permute.xlu1 %v1490_v61 }
  0x7c   : > { %761 = vperm.xlu1 %1408, %v1719_v58  }
  0x7f   : > { %686 = vperm.xlu0 %1420, %v663_v10  }
  0x80   : > { %1409 = vset.pattern.permute.xlu1 %v1487_v32 }
  0x81   : > { %837 = vperm.xlu1 %1409, %v607_v56  }
  0x85   : > { %671 = vperm.xlu1 %1409, %v658_v11  }
  0x89   : > { %1410 = vset.pattern.permute.xlu1 %v1491_v1 }
  0x8a   : > { %801 = vperm.xlu1 %1410, %v1719_v58  }
  0x8e   : > { %1411 = vset.pattern.permute.xlu1 %v1490_v61 }
  0x8f   : > { %765 = vperm.xlu1 %1411, %v1728_v60  }
  0x93   : > { %1412 = vset.pattern.permute.xlu1 %v1487_v32 }
  0x94   : > { %841 = vperm.xlu1 %1412, %v1719_v58  }
  0x98   : > { %674 = vperm.xlu1 %1412, %v659_v12  }
  0x9c   : > { %1413 = vset.pattern.permute.xlu1 %v1491_v1 }
  0x9d   : > { %805 = vperm.xlu1 %1413, %v1728_v60  }
  0x9e   : > { %560 = vadd.xlane.f32.xlu0 %v559_v14 }
  0xa1   : > { %1414 = vset.pattern.permute.xlu1 %v1490_v61 }
  0xa2   : > { %769 = vperm.xlu1 %1414, %v1735_v62  }
  0xa6   : > { %1415 = vset.pattern.permute.xlu1 %v1487_v32 }
  0xa7   : > { %845 = vperm.xlu1 %1415, %v1728_v60  }
  0xab   : > { %677 = vperm.xlu1 %1415, %v660_v15  }
  0xaf   : > { %1416 = vset.pattern.permute.xlu1 %v1491_v1 }
  0xb0   : > { %v1819_v16 = vpop.xlane.xlu1 %1027  ;;  %809 = vperm.xlu1 %1416, %v1735_v62  }
  0xb1   : > { %v1821_v17 = vpop.xlane.xlu0 %1021  ;;  %v1046_v18 = vsub.f32 %v1629_v21, %v1819_v16 }
  0xb2   : > { %v1044_v19 = vsub.f32 %v1634_v27, %v1821_v17 }
  0xb3   : > { %v1056_v22 = vmul.f32 1.442695, %v1046_v18 }
  0xb4   : > { %v1052_v20 = vmul.f32 1.442695, %v1044_v19  ;;  %v1828_v23 = vpop.xlane.xlu1 %1030  ;;  %1417 = vset.pattern.permute.xlu1 %v1490_v61 }
  0xb5   : > { %v1830_v24 = vpop.xlane.xlu0 %1024  ;;  %773 = vperm.xlu1 %1417, %v1741_v63  }
  0xb6   : > { %1425 = vpow2.f32 %v1052_v20  ;;  %v1905_v20 = vshra.s32 %v1855_v50, 2 }
  0xb7   : > { %1427 = vpow2.f32 %v1056_v22 }
  0xb8   : > { %v1834_v25 = vpop.xlane.xlu1 %1036 }
  0xb9   : > { %v1836_v26 = vpop.xlane.xlu0 %1033  ;;  %1418 = vset.pattern.permute.xlu1 %v1487_v32 }
  0xba   : > { %v1048_v29 = vsub.f32 %v1669_v37, %v1836_v26  ;;  %849 = vperm.xlu1 %1418, %v1735_v62  }
  0xbc   : > { %v1060_v30 = vmul.f32 1.442695, %v1048_v29  ;;  %v1844_v34 = vpop.xlane.xlu1 %1042  ;;  %v1346_v29 = vsel %vm960_vm11, 1.0, %v1488_v38 }
  0xbd   : > { %v1846_v35 = vpop.xlane.xlu0 %1039 }
  0xbe   : > { %v1050_v39 = vsub.f32 %v1698_v48, %v1846_v35  ;;  %1429 = vpow2.f32 %v1060_v30  ;;  %680 = vperm.xlu1 %1418, %v661_v33  }
  0xc0   : > { %v1064_v40 = vmul.f32 1.442695, %v1050_v39  ;;  %v1426_v41 = vpop.eup %1425  ;;  %v1850_v42 = vpop.permute.xlu1 %620  ;;  %v987_v39 = vsel %vm981_vm8, %v1346_v29, 0.0 }
  0xc1   : > { %v1068_v44 = vsel %vm1019_vm6, %v1426_v41, 0.0  ;;  %v1428_v45 = vpop.eup %1427  ;;  %vm641_vm13 = vcmp.eq.s32.totalorder %v1905_v20, %v1850_v42  ;;  %v1347_v41 = vsel %vm961_vm12, 1.0, %v1488_v38  ;;  %v988_v43 = vadd.f32 %v987_v39, %v1707_v55 }
  0xc2   : > { %1431 = vpow2.f32 %v1064_v40  ;;  %1069 = vadd.xlane.f32.xlu0 %v1068_v44  ;;  %1419 = vset.pattern.permute.xlu1 %v1491_v1  ;;  %v1074_v51 = vsel %vm1019_vm6, %v1428_v45, 0.0  ;;  %v1045_v44 = vsub.f32 %v1648_v31, %v1830_v24  ;;  %v1047_v55 = vsub.f32 %v1639_v28, %v1828_v23 }
  0xc3   : > { %813 = vperm.xlu1 %1419, %v1741_v63  }
  0xc4   : > { %v711_v46 = vpop.permute.xlu1 %710 }
  0xc5   : > { %v721_v49 = vpop.permute.xlu0 %720 }
  0xc6   : > { %1075 = vadd.xlane.f32.xlu0 %v1074_v51 }
  0xc7   : > { %1421 = vset.pattern.permute.xlu1 %v1490_v61 }
  0xc8   : > { %v1430_v53 = vpop.eup %1429  ;;  %v716_v54 = vpop.permute.xlu1 %715  ;;  %777 = vperm.xlu1 %1421, %v1748_v0  }
  0xc9   : > { %v1863_v56 = vpop.permute.xlu0 %725  ;;  %v1080_v57 = vsel %vm1019_vm6, %v1430_v53, 0.0  ;;  %v1348_v53 = vsel %vm962_vm0, 1.0, %v1488_v38 }
  0xca   : > { %1081 = vadd.xlane.f32.xlu0 %v1080_v57 }
  0xcc   : > { %v1432_v58 = vpop.eup %1431  ;;  %1422 = vset.pattern.permute.xlu1 %v1487_v32 }
  0xcd   : > { %v1868_v59 = vpop.permute.xlu0 %730  ;;  %v750_v60 = vpop.permute.xlu1 %749  ;;  %853 = vperm.xlu1 %1422, %v1741_v63   ;;  %v1086_v61 = vsel %vm1019_vm6, %v1432_v58, 0.0 }
  0xce   : > { %v780_v62 = vsel %vm707_vm4, %v711_v46, %v750_v60  ;;  %1087 = vadd.xlane.f32.xlu0 %v1086_v61 }
  0xd1   : > { %v1874_v2 = vpop.permute.xlu0 %735  ;;  %v754_v7 = vpop.permute.xlu1 %753  ;;  %1423 = vset.pattern.permute.xlu1 %v1491_v1 }
  0xd2   : > { %v781_v9 = vsel %vm707_vm4, %v716_v54, %v754_v7  ;;  %817 = vperm.xlu1 %1423, %v1748_v0   ;;  %v1054_v54 = vmul.f32 1.442695, %v1045_v44  ;;  %v991_v7 = vsel %vm981_vm8, %v1348_v53, 0.0 }
  0xd4   : > { %1433 = vpow2.f32 %v1054_v54 }
  0xd5   : > { %v1880_v10 = vpop.permute.xlu0 %740 }
  0xd6   : > { %v1882_v11 = vpop.permute.xlu1 %623  ;;  %1424 = vset.pattern.permute.xlu1 %v1487_v32 }
  0xd7   : > { %857 = vperm.xlu1 %1424, %v1748_v0   ;;  %vm1118_vm7 = vcmp.eq.s32.totalorder %v1855_v50, %v1882_v11 }
  0xd8   : > { %v1126_v19 = vsel %vm1118_vm7, %v1629_v21, 0.0  ;;  %vm964_vm7 = vcmp.ge.s32.totalorder %v1788_v8, 0 }
  0xd9   : > { %v1886_v63 = vpop.permute.xlu0 %745  ;;  %v1138_v30 = vsel %vm1019_vm6, %v1126_v19, 0.0 }
  0xdb   : > { %v790_v12 = vpop.permute.xlu1 %789 }
  0xdc   : > { %v820_v1 = vsel %vm706_vm5, %v790_v12, %v780_v62 }
  0xde   : > { %v1891_v13 = vpop.permute.xlu0 %617 }
  0xdf   : > { %vm1116_vm9 = vcmp.eq.s32.totalorder %v1855_v50, %v1891_v13  ;;  %v794_v14 = vpop.permute.xlu1 %793 }
  0xe0   : > { %v1124_v32 = vsel %vm1116_vm9, %v1634_v27, 0.0  ;;  %v821_v0 = vsel %vm706_vm5, %v794_v14, %v781_v9  ;;  %v598_v27 = vld [vmem:[%s2127_s6 + $0x8] sm:$0xff]  ;;  %v1349_v9 = vsel %vm963_vm3, 1.0, %v1488_v38  ;;  %vm640_vm9 = vcmp.eq.s32.totalorder %v1905_v20, %v1891_v13 }
  0xe1   : > { %v1132_v15 = vsel %vm1019_vm6, %v1124_v32, 0.0 }
  0xe2   : > { %v834_v18 = vpop.permute.xlu0 %833  ;;  %1133 = vadd.xlane.f32.xlu0 %v1132_v15 }
  0xe3   : > { %v861_v22 = vsel %vm705_vm10, %v834_v18, %v821_v0  ;;  %v993_v18 = vsel %vm981_vm8, %v1349_v9, 0.0 }
  0xe4   : > { %v758_v4 = vpop.permute.xlu1 %757  ;;  %v869_v40 = vsub.f32 %v598_v27, %v861_v22  ;;  %v569_v27 = vld [vmem:[#allocation2 + $0x2] sm:$0x1] }
  0xe5   : > { %v1917_v21 = vsel %vm707_vm4, %v721_v49, %v758_v4  ;;  %v989_v49 = vsel %vm981_vm8, %v1347_v41, 0.0  ;;  %v1350_v4 = vsel %vm964_vm7, 1.0, %v1488_v38  ;;  %v570_v38 = vsel %vm547_vm1, %v569_v27, 0.0 }
  0xe6   : > { %v669_v33 = vpop.permute.xlu0 %668  ;;  %1139 = vadd.xlane.f32.xlu0 %v1138_v30  ;;  %v990_v62 = vadd.f32 %v989_v49, %v988_v43  ;;  %v546_v43 = vld [vmem:[#allocation2] sm:$0x1]  ;;  %v995_v8 = vsel %vm981_vm8, %v1350_v4, 0.0  ;;  %vm1117_vm7 = vcmp.eq.s32.totalorder %v1855_v50, %v1850_v42 }
  0xe7   : > { %vm689_vm14 = vcmp.eq.s32.totalorder %v669_v33, 1 }
  0xe8   : > { %vm697_vm15 = vmand %vm641_vm13, %vm689_vm14  ;;  %v992_v15 = vadd.f32 %v991_v7, %v990_v62  ;;  %v1434_v7 = vpop.eup %1433 }
  0xe9   : > { %v877_v3 = vsel %vm697_vm15, %v869_v40, 0.0  ;;  %v830_v45 = vpop.permute.xlu1 %829  ;;  %v1051_v40 = vsub.f32 %v1693_v47, %v1844_v34  ;;  %vm932_vm15 = vcmask 261120  }
  0xea   : > { %v1927_v46 = vpop.permute.xlu0 %629  ;;  %v860_v51 = vsel %vm705_vm10, %v830_v45, %v820_v1  ;;  %v901_v57 = vmul.f32 0.5, %v877_v3  ;;  %v885_v12 = vand.u32 2147483647, %v877_v3  ;;  %v1049_v1 = vsub.f32 %v1663_v36, %v1834_v25 }
  0xeb   : > { %vm1120_vm2 = vcmp.eq.s32.totalorder %v1855_v50, %v1927_v46  ;;  %v868_v22 = vsub.f32 %v597_v6, %v860_v51  ;;  %v994_v44 = vadd.f32 %v993_v18, %v992_v15 }
  0xec   : > { %v1128_v5 = vsel %vm1120_vm2, %v1669_v37, 0.0  ;;  %v1058_v37 = vmul.f32 1.442695, %v1047_v55  ;;  %v909_v14 = vmul.f32 %v901_v57, %v877_v3  ;;  %v1336_v19 = vadd.f32 -0.5, %v885_v12 }
  0xed   : > { %v1939_v58 = vpop.permute.xlu1 %626  ;;  %v1144_v61 = vsel %vm1019_vm6, %v1128_v5, 0.0  ;;  %vm1959_vm13 = vcmp.lt.f32.partialorder %v885_v12, 1.0  ;;  %v1062_v30 = vmul.f32 1.442695, %v1049_v1  ;;  %v548_v55 = vsel %vm547_vm1, %v546_v43, 0.0 }
  0xee   : > { %v1941_v60 = vpop.permute.xlu0 %632  ;;  %1145 = vadd.xlane.f32.xlu0 %v1144_v61  ;;  %1435 = vpow2.f32 %v1058_v37  ;;  %v1066_v5 = vmul.f32 1.442695, %v1051_v40  ;;  %v996_v57 = vadd.f32 %v995_v8, %v994_v44  ;;  %v1071_v37 = vsel %vm1019_vm6, %v1434_v7, 0.0 }
  0xef   : > { %1437 = vpow2.f32 %v1062_v30  ;;  %vm642_vm1 = vcmp.eq.s32.totalorder %v1905_v20, %v1882_v11  ;;  %v1125_v11 = vsel %vm1117_vm7, %v1648_v31, 0.0 }
  0xf0   : > { %1439 = vpow2.f32 %v1066_v5  ;;  %v1135_v42 = vsel %vm1019_vm6, %v1125_v11, 0.0  ;;  %v602_v11 = vld [vmem:[%s2127_s6 + $0x28] sm:$0xff] }
  0xf1   : > { %v666_v0 = vpop.permute.xlu1 %665 }
  0xf2   : > { %v1954_v32 = vpop.permute.xlu0 %635  ;;  %vm688_vm12 = vcmp.eq.s32.totalorder %v666_v0, 1 }
  0xf3   : > { %vm1122_vm11 = vcmp.eq.s32.totalorder %v1855_v50, %v1954_v32  ;;  %vm696_vm14 = vmand %vm640_vm9, %vm688_vm12  ;;  %vm1121_vm12 = vcmp.eq.s32.totalorder %v1855_v50, %v1941_v60 }
  0xf4   : > { %v1130_v13 = vsel %vm1122_vm11, %v1698_v48, 0.0  ;;  %v876_v33 = vsel %vm696_vm14, %v868_v22, 0.0  ;;  %v925_v48 = vsel %vm1959_vm13, %v909_v14, %v1336_v19  ;;  %v599_v14 = vld [vmem:[%s2127_s6 + $0x10] sm:$0xff]  ;;  %vm1119_vm11 = vcmp.eq.s32.totalorder %v1855_v50, %v1939_v58 }
  0xf5   : > { %v1150_v39 = vsel %vm1019_vm6, %v1130_v13, 0.0  ;;  %v884_v41 = vand.u32 2147483647, %v876_v33  ;;  %v900_v3 = vmul.f32 0.5, %v876_v33  ;;  %v934_v61 = vsel %vm932_vm15, %v925_v48, 0.0 }
  0xf6   : > { %1151 = vadd.xlane.f32.xlu0 %v1150_v39  ;;  %v798_v45 = vpop.permute.xlu1 %797  ;;  %v1127_v48 = vsel %vm1119_vm11, %v1639_v28, 0.0  ;;  %v1129_v8 = vsel %vm1121_vm12, %v1663_v36, 0.0  ;;  %v600_v28 = vld [vmem:[%s2127_s6 + $0x18] sm:$0xff]  ;;  %vm643_vm14 = vcmp.eq.s32.totalorder %v1905_v20, %v1939_v58  ;;  %vm645_vm11 = vcmp.eq.s32.totalorder %v1905_v20, %v1941_v60 }
  0xf7   : > { %vm892_vm0 = vcmp.lt.f32.partialorder %v884_v41, 1.0  ;;  %v908_v49 = vmul.f32 %v900_v3, %v876_v33  ;;  %v1335_v51 = vadd.f32 -0.5, %v884_v41  ;;  %v822_v53 = vsel %vm706_vm5, %v798_v45, %v1917_v21 }
  0xf8   : > { %v1436_v21 = vpop.eup %1435  ;;  %v1141_v45 = vsel %vm1019_vm6, %v1127_v48, 0.0 }
  0xf9   : > { %v924_v54 = vsel %vm892_vm0, %v908_v49, %v1335_v51  ;;  %v1077_v15 = vsel %vm1019_vm6, %v1436_v21, 0.0  ;;  %v1438_v18 = vpop.eup %1437 }
  0xfa   : > { %571 = vadd.xlane.f32.xlu0 %v570_v38  ;;  %v933_v62 = vsel %vm932_vm15, %v924_v54, 0.0  ;;  %v1083_v22 = vsel %vm1019_vm6, %v1438_v18, 0.0  ;;  %v1440_v29 = vpop.eup %1439  ;;  %v2005_v38 = vpop.permute.xlu0 %638 }
  0xfb   : > { %v935_v9 = vadd.f32 %v934_v61, %v933_v62  ;;  %v762_v12 = vpop.permute.xlu1 %761  ;;  %549 = vadd.xlane.f32.xlu1 %v548_v55  ;;  %v1089_v40 = vsel %vm1019_vm6, %v1440_v29, 0.0  ;;  %vm1123_vm13 = vcmp.eq.s32.totalorder %v1855_v50, %v2005_v38 }
  0xfc   : > { %v783_v6 = vsel %vm707_vm4, %v1863_v56, %v762_v12  ;;  %v1131_v5 = vsel %vm1123_vm13, %v1693_v47, 0.0 }
  0xfd   : > { %v1153_v54 = vsel %vm1019_vm6, %v1131_v5, 0.0 }
  0xfe   : > { %997 = vadd.xlane.f32.xlu0 %v996_v57 }
  0xff   : > { %1072 = vadd.xlane.f32.xlu1 %v1071_v37 }
 0x100   : > { %v838_v1 = vpop.permute.xlu1 %837 }
 0x101   : > { %v862_v0 = vsel %vm705_vm10, %v838_v1, %v822_v53  ;;  %v1147_v53 = vsel %vm1019_vm6, %v1129_v8, 0.0  ;;  %vm644_vm6 = vcmp.eq.s32.totalorder %v1905_v20, %v1927_v46 }
 0x102   : > { %v870_v56 = vsub.f32 %v599_v14, %v862_v0  ;;  %v601_v14 = vld [vmem:[%s2127_s6 + $0x20] sm:$0xff] }
 0x103   : > { %1078 = vadd.xlane.f32.xlu1 %v1077_v15 }
 0x104   : > { %v672_v19 = vpop.permute.xlu1 %671 }
 0x105   : > { %vm690_vm2 = vcmp.eq.s32.totalorder %v672_v19, 1 }
 0x106   : > { %vm698_vm3 = vmand %vm642_vm1, %vm690_vm2 }
 0x107   : > { %v878_v13 = vsel %vm698_vm3, %v870_v56, 0.0  ;;  %1084 = vadd.xlane.f32.xlu1 %v1083_v22 }
 0x108   : > { %v886_v27 = vand.u32 2147483647, %v878_v13  ;;  %v902_v4 = vmul.f32 0.5, %v878_v13 }
 0x109   : > { %v802_v30 = vpop.permute.xlu1 %801 }
 0x10a   : > { %vm894_vm9 = vcmp.lt.f32.partialorder %v886_v27, 1.0  ;;  %v910_v33 = vmul.f32 %v902_v4, %v878_v13  ;;  %v1337_v39 = vadd.f32 -0.5, %v886_v27  ;;  %v823_v49 = vsel %vm706_vm5, %v802_v30, %v783_v6 }
 0x10b   : > { %1090 = vadd.xlane.f32.xlu1 %v1089_v40 }
 0x10c   : > { %v926_v41 = vsel %vm894_vm9, %v910_v33, %v1337_v39 }
 0x10d   : > { %v936_v3 = vsel %vm932_vm15, %v926_v41, 0.0 }
 0x10e   : > { %v937_v43 = vadd.f32 %v936_v3, %v935_v9  ;;  %v766_v44 = vpop.permute.xlu1 %765 }
 0x10f   : > { %1136 = vadd.xlane.f32.xlu1 %v1135_v42  ;;  %v784_v58 = vsel %vm707_vm4, %v1868_v59, %v766_v44 }
 0x113   : > { %v842_v31 = vpop.permute.xlu1 %841  ;;  %1142 = vadd.xlane.f32.xlu1 %v1141_v45 }
 0x114   : > { %v863_v51 = vsel %vm705_vm10, %v842_v31, %v823_v49 }
 0x115   : > { %v871_v36 = vsub.f32 %v600_v28, %v863_v51 }
 0x117   : > { %v675_v55 = vpop.permute.xlu1 %674  ;;  %1148 = vadd.xlane.f32.xlu1 %v1147_v53  ;;  %v684_v53 = vpop.permute.xlu0 %683 }
 0x118   : > { %vm691_vm0 = vcmp.eq.s32.totalorder %v675_v55, 1  ;;  %v603_v55 = vld [vmem:[%s2127_s6 + $0x30] sm:$0xff] }
 0x119   : > { %vm699_vm1 = vmand %vm643_vm14, %vm691_vm0  ;;  %vm646_vm0 = vcmp.eq.s32.totalorder %v1905_v20, %v1954_v32 }
 0x11a   : > { %v879_v50 = vsel %vm699_vm1, %v871_v36, 0.0  ;;  %vm694_vm1 = vcmp.eq.s32.totalorder %v684_v53, 1 }
 0x11b   : > { %v887_v57 = vand.u32 2147483647, %v879_v50  ;;  %v903_v61 = vmul.f32 0.5, %v879_v50  ;;  %1154 = vadd.xlane.f32.xlu1 %v1153_v54 }
 0x11c   : > { %v806_v62 = vpop.permute.xlu1 %805 }
 0x11d   : > { %vm895_vm2 = vcmp.lt.f32.partialorder %v887_v57, 1.0  ;;  %v911_v7 = vmul.f32 %v903_v61, %v879_v50  ;;  %v1338_v9 = vadd.f32 -0.5, %v887_v57  ;;  %v824_v1 = vsel %vm706_vm5, %v806_v62, %v784_v58 }
 0x11f   : > { %v927_v12 = vsel %vm895_vm2, %v911_v7, %v1338_v9  ;;  %vm702_vm2 = vmand %vm646_vm0, %vm694_vm1  ;;  %v687_v7 = vpop.permute.xlu0 %686 }
 0x120   : > { %v938_v6 = vsel %vm932_vm15, %v927_v12, 0.0 }
 0x121   : > { %v770_v47 = vpop.permute.xlu1 %769  ;;  %v939_v21 = vadd.f32 %v938_v6, %v937_v43  ;;  %v604_v6 = vld [vmem:[%s2127_s6 + $0x38] sm:$0xff] }
 0x122   : > { %v785_v39 = vsel %vm707_vm4, %v1874_v2, %v770_v47 }
 0x126   : > { %v846_v37 = vpop.permute.xlu1 %845 }
 0x127   : > { %v864_v0 = vsel %vm705_vm10, %v846_v37, %v824_v1 }
 0x128   : > { %v872_v18 = vsub.f32 %v601_v14, %v864_v0 }
 0x12a   : > { %v678_v15 = vpop.permute.xlu1 %677 }
 0x12b   : > { %vm692_vm3 = vcmp.eq.s32.totalorder %v678_v15, 1 }
 0x12c   : > { %vm700_vm7 = vmand %vm644_vm6, %vm692_vm3  ;;  %vm647_vm3 = vcmp.eq.s32.totalorder %v1905_v20, %v2005_v38 }
 0x12d   : > { %v880_v19 = vsel %vm700_vm7, %v872_v18, 0.0  ;;  %vm695_vm7 = vcmp.eq.s32.totalorder %v687_v7, 1 }
 0x12e   : > { %v888_v59 = vand.u32 2147483647, %v880_v19  ;;  %v904_v56 = vmul.f32 0.5, %v880_v19 }
 0x12f   : > { %v810_v22 = vpop.permute.xlu1 %809 }
 0x130   : > { %vm896_vm9 = vcmp.lt.f32.partialorder %v888_v59, 1.0  ;;  %v912_v29 = vmul.f32 %v904_v56, %v880_v19  ;;  %v1339_v13 = vadd.f32 -0.5, %v888_v59  ;;  %v825_v40 = vsel %vm706_vm5, %v810_v22, %v785_v39 }
 0x132   : > { %v928_v27 = vsel %vm896_vm9, %v912_v29, %v1339_v13 }
 0x133   : > { %v940_v4 = vsel %vm932_vm15, %v928_v27, 0.0 }
 0x134   : > { %v774_v30 = vpop.permute.xlu1 %773  ;;  %v941_v33 = vadd.f32 %v940_v4, %v939_v21 }
 0x135   : > { %v786_v60 = vsel %vm707_vm4, %v1880_v10, %v774_v30 }
 0x139   : > { %v850_v46 = vpop.permute.xlu1 %849 }
 0x13a   : > { %v865_v41 = vsel %vm705_vm10, %v850_v46, %v825_v40 }
 0x13b   : > { %v873_v43 = vsub.f32 %v602_v11, %v865_v41 }
 0x13d   : > { %v681_v3 = vpop.permute.xlu1 %680 }
 0x13e   : > { %vm693_vm12 = vcmp.eq.s32.totalorder %v681_v3, 1 }
 0x13f   : > { %vm701_vm13 = vmand %vm645_vm11, %vm693_vm12 }
 0x140   : > { %v881_v44 = vsel %vm701_vm13, %v873_v43, 0.0 }
 0x141   : > { %v889_v2 = vand.u32 2147483647, %v881_v44  ;;  %v905_v42 = vmul.f32 0.5, %v881_v44 }
 0x142   : > { %v814_v48 = vpop.permute.xlu1 %813 }
 0x143   : > { %vm897_vm14 = vcmp.lt.f32.partialorder %v889_v2, 1.0  ;;  %v913_v45 = vmul.f32 %v905_v42, %v881_v44  ;;  %v1340_v31 = vadd.f32 -0.5, %v889_v2  ;;  %v826_v5 = vsel %vm706_vm5, %v814_v48, %v786_v60 }
 0x145   : > { %v929_v8 = vsel %vm897_vm14, %v913_v45, %v1340_v31 }
 0x146   : > { %v942_v49 = vsel %vm932_vm15, %v929_v8, 0.0 }
 0x147   : > { %v778_v28 = vpop.permute.xlu1 %777  ;;  %v943_v51 = vadd.f32 %v942_v49, %v941_v33 }
 0x148   : > { %v787_v32 = vsel %vm707_vm4, %v1886_v63, %v778_v28  ;;  %v561_v63 = vpop.xlane.xlu0 %560  ;;  %vm703_vm4 = vmand %vm647_vm3, %vm695_vm7 }
 0x149   : > { %v562_v39 = vrot.slane %v561_v63, 4 }
 0x14b   : > { %v563_v40 = vadd.f32 %v562_v39, %v561_v63 }
 0x14c   : > { %v854_v36 = vpop.permute.xlu1 %853 }
 0x14d   : > { %v866_v50 = vsel %vm705_vm10, %v854_v36, %v826_v5  ;;  %v564_v3 = vrot.slane %v563_v40, 2 }
 0x14e   : > { %v874_v54 = vsub.f32 %v603_v55, %v866_v50 }
 0x14f   : > { %v1070_v38 = vpop.xlane.xlu0 %1069  ;;  %v565_v31 = vadd.f32 %v564_v3, %v563_v40 }
 0x150   : > { %v882_v57 = vsel %vm702_vm2, %v874_v54, 0.0  ;;  %1441 = vlog2.f32 %v1070_v38 }
 0x151   : > { %v890_v61 = vand.u32 2147483647, %v882_v57  ;;  %v906_v10 = vmul.f32 0.5, %v882_v57  ;;  %v818_v62 = vpop.permute.xlu1 %817  ;;  %v566_v60 = vrot.slane %v565_v31, 1 }
 0x152   : > { %v827_v21 = vsel %vm706_vm5, %v818_v62, %v787_v32 }
 0x153   : > { %v914_v9 = vmul.f32 %v906_v10, %v882_v57  ;;  %v1341_v12 = vadd.f32 -0.5, %v890_v61  ;;  %vm898_vm6 = vcmp.lt.f32.partialorder %v890_v61, 1.0  ;;  %v1076_v13 = vpop.xlane.xlu0 %1075  ;;  %v567_v61 = vadd.f32 %v566_v60, %v565_v31 }
 0x154   : > { %1443 = vlog2.f32 %v1076_v13 }
 0x155   : > { %v930_v47 = vsel %vm898_vm6, %v914_v9, %v1341_v12 }
 0x156   : > { %v858_v58 = vpop.permute.xlu1 %857  ;;  %v944_v37 = vsel %vm932_vm15, %v930_v47, 0.0 }
 0x157   : > { %v867_v1 = vsel %vm705_vm10, %v858_v58, %v827_v21  ;;  %v945_v14 = vadd.f32 %v944_v37, %v943_v51  ;;  %v1082_v27 = vpop.xlane.xlu0 %1081 }
 0x158   : > { %v875_v0 = vsub.f32 %v604_v6, %v867_v1 }
 0x15a   : > { %v883_v15 = vsel %vm703_vm4, %v875_v0, 0.0  ;;  %v1442_v5 = vpop.eup %1441 }
 0x15b   : > { %v891_v18 = vand.u32 2147483647, %v883_v15  ;;  %v907_v19 = vmul.f32 0.5, %v883_v15  ;;  %v1088_v52 = vpop.xlane.xlu0 %1087  ;;  %v1093_v10 = vmul.f32 0.6931472, %v1442_v5 }
 0x15d   : > { %v915_v59 = vmul.f32 %v907_v19, %v883_v15  ;;  %vm899_vm9 = vcmp.lt.f32.partialorder %v891_v18, 1.0  ;;  %v1342_v20 = vadd.f32 -0.5, %v891_v18  ;;  %v1108_v6 = vadd.f32 %v1093_v10, %v1821_v17 }
 0x15e   : > { %v1444_v54 = vpop.eup %1443 }
 0x15f   : > { %v931_v56 = vsel %vm899_vm9, %v915_v59, %v1342_v20  ;;  %v1097_v7 = vmul.f32 0.6931472, %v1444_v54 }
 0x160   : > { %v946_v22 = vsel %vm932_vm15, %v931_v56, 0.0 }
 0x161   : > { %v947_v29 = vadd.f32 %v946_v22, %v945_v14  ;;  %v1110_v1 = vadd.f32 %v1097_v7, %v1819_v16 }
 0x163   : > { %948 = vadd.xlane.f32.xlu1 %v947_v29 }
 0x16f   : > { %v1134_v4 = vpop.xlane.xlu0 %1133 }
 0x170   : > { %v1156_v37 = vsub.f32 %v1108_v6, %v1134_v4 }
 0x172   : > { %v1164_v17 = vsel %vm981_vm8, %v1156_v37, 0.0 }
 0x173   : > { %v2075_v30 = vpop.xlane.xlu0 %1139 }
 0x174   : > { %v1158_v15 = vsub.f32 %v1110_v1, %v2075_v30 }
 0x176   : > { %v1167_v16 = vsel %vm981_vm8, %v1158_v15, 0.0 }
 0x17b   : > { %v2077_v33 = vpop.xlane.xlu0 %1145 }
 0x183   : > { %v2079_v46 = vpop.xlane.xlu0 %1151 }
 0x187   : > { %v572_v11 = vpop.xlane.xlu0 %571 }
 0x188   : > { %v573_v41 = vrot.slane %v572_v11, 4  ;;  %v550_v43 = vpop.xlane.xlu1 %549 }
 0x189   : > { %v551_v44 = vrot.slane %v550_v43, 4 }
 0x18a   : > { %v574_v2 = vadd.f32 %v573_v41, %v572_v11 }
 0x18b   : > { %v552_v42 = vadd.f32 %v551_v44, %v550_v43 }
 0x18c   : > { %v575_v48 = vrot.slane %v574_v2, 2  ;;  %v1073_v45 = vpop.xlane.xlu1 %1072 }
 0x18d   : > { %v553_v8 = vrot.slane %v552_v42, 2  ;;  %1445 = vlog2.f32 %v1073_v45 }
 0x18e   : > { %v576_v49 = vadd.f32 %v575_v48, %v574_v2  ;;  %1447 = vlog2.f32 %v1082_v27 }
 0x18f   : > { %v554_v28 = vadd.f32 %v553_v8, %v552_v42 }
 0x190   : > { %v577_v51 = vrot.slane %v576_v49, 1  ;;  %v1079_v53 = vpop.xlane.xlu1 %1078 }
 0x191   : > { %1449 = vlog2.f32 %v1079_v53  ;;  %v555_v55 = vrot.slane %v554_v28, 1 }
 0x192   : > { %1451 = vlog2.f32 %v1088_v52  ;;  %v578_v50 = vadd.f32 %v577_v51, %v576_v49  ;;  %v998_v49 = vpop.xlane.xlu0 %997 }
 0x193   : > { %v556_v36 = vadd.f32 %v555_v55, %v554_v28  ;;  %v999_v28 = vrot.slane %v998_v49, 4 }
 0x194   : > { %v1085_v57 = vpop.xlane.xlu1 %1084 }
 0x195   : > { %1453 = vlog2.f32 %v1085_v57  ;;  %1355 = vpush %v556_v36  ;;  %v1000_v51 = vadd.f32 %v999_v28, %v998_v49 }
 0x196   : > { %1357 = vpush %v567_v61 }
 0x197   : > { %v1446_v62 = vpop.eup %1445  ;;  %1359 = vpush %v578_v50  ;;  %v1001_v53 = vrot.slane %v1000_v51, 2 }
 0x198   : > { %v1448_v9 = vpop.eup %1447  ;;  %v1095_v12 = vmul.f32 0.6931472, %v1446_v62  ;;  %v1091_v32 = vpop.xlane.xlu1 %1090 }
 0x199   : > { %1455 = vlog2.f32 %v1091_v32  ;;  %v1101_v58 = vmul.f32 0.6931472, %v1448_v9  ;;  %v1002_v5 = vadd.f32 %v1001_v53, %v1000_v51 }
 0x19a   : > { %v1109_v47 = vadd.f32 %v1095_v12, %v1830_v24 }
 0x19b   : > { %v1450_v21 = vpop.eup %1449  ;;  %v1112_v38 = vadd.f32 %v1101_v58, %v1836_v26  ;;  %v1003_v54 = vrot.slane %v1002_v5, 1 }
 0x19c   : > { %v1452_v14 = vpop.eup %1451  ;;  %v1099_v63 = vmul.f32 0.6931472, %v1450_v21  ;;  %v1137_v0 = vpop.xlane.xlu1 %1136 }
 0x19d   : > { %v1157_v18 = vsub.f32 %v1109_v47, %v1137_v0  ;;  %v1105_v20 = vmul.f32 0.6931472, %v1452_v14  ;;  %v1160_v13 = vsub.f32 %v1112_v38, %v2077_v33  ;;  %v1004_v10 = vadd.f32 %v1003_v54, %v1002_v5 }
 0x19e   : > { %v1111_v19 = vadd.f32 %v1099_v63, %v1828_v23 }
 0x19f   : > { %v1454_v59 = vpop.eup %1453  ;;  %v1165_v24 = vsel %vm981_vm8, %v1157_v18, 0.0  ;;  %v1114_v30 = vadd.f32 %v1105_v20, %v1846_v35  ;;  %v1171_v41 = vsel %vm981_vm8, %v1160_v13, 0.0 }
 0x1a0   : > { %v1103_v56 = vmul.f32 0.6931472, %v1454_v59  ;;  %v1166_v22 = vadd.f32 %v1165_v24, %v1164_v17  ;;  %v1143_v29 = vpop.xlane.xlu1 %1142 }
 0x1a1   : > { %v1159_v27 = vsub.f32 %v1111_v19, %v1143_v29  ;;  %v1162_v3 = vsub.f32 %v1114_v30, %v2079_v46 }
 0x1a2   : > { %v1168_v52 = vadd.f32 %v1167_v16, %v1166_v22  ;;  %v1113_v4 = vadd.f32 %v1103_v56, %v1834_v25 }
 0x1a3   : > { %v1456_v23 = vpop.eup %1455  ;;  %v1169_v39 = vsel %vm981_vm8, %v1159_v27, 0.0  ;;  %v1175_v48 = vsel %vm981_vm8, %v1162_v3, 0.0 }
 0x1a4   : > { %v1107_v40 = vmul.f32 0.6931472, %v1456_v23  ;;  %v1170_v26 = vadd.f32 %v1169_v39, %v1168_v52  ;;  %v1149_v11 = vpop.xlane.xlu1 %1148 }
 0x1a5   : > { %v1161_v43 = vsub.f32 %v1113_v4, %v1149_v11 }
 0x1a6   : > { %v1172_v44 = vadd.f32 %v1171_v41, %v1170_v26  ;;  %v1115_v33 = vadd.f32 %v1107_v40, %v1844_v34 }
 0x1a7   : > { %v1173_v2 = vsel %vm981_vm8, %v1161_v43, 0.0 }
 0x1a8   : > { %v1174_v42 = vadd.f32 %v1173_v2, %v1172_v44  ;;  %v1155_v25 = vpop.xlane.xlu1 %1154 }
 0x1a9   : > { %v1163_v35 = vsub.f32 %v1115_v33, %v1155_v25 }
 0x1aa   : > { %v1176_v45 = vadd.f32 %v1175_v48, %v1174_v42 }
 0x1ab   : > { %v1177_v31 = vsel %vm981_vm8, %v1163_v35, 0.0 }
 0x1ac   : > { %v1178_v8 = vadd.f32 %v1177_v31, %v1176_v45 }
 0x1ae   : > { %1179 = vadd.xlane.f32.xlu1 %v1178_v8 }
 0x1c6   : > { %s2100_s28 = spop %1355 }
 0x1c7   : > { %s1358_s29 = spop %1357 }
 0x1c8   : > { %s580_s11 = smax.f32 %s1492_s30, %s1358_s29  ;;  %s1360_s15 = spop %1359 }
 0x1c9   : > { %v581_v46 = vstv %s580_s11 }
 0x1ca   : > { %1457 = vrcp.f32 %v581_v46 }
 0x1d4   : > { %v1458_v34 = vpop.eup %1457 }
 0x1d5   : > { %1361 = vpush %v1458_v34 }
 0x1f0   : > { %v949_v60 = vpop.xlane.xlu1 %948 }
 0x1f1   : > { %v950_v55 = vrot.slane %v949_v60, 4 }
 0x1f3   : > { %v951_v36 = vadd.f32 %v950_v55, %v949_v60 }
 0x1f5   : > { %v952_v50 = vrot.slane %v951_v36, 2 }
 0x1f7   : > { %v953_v57 = vadd.f32 %v952_v50, %v951_v36 }
 0x1f9   : > { %v954_v61 = vrot.slane %v953_v57, 1 }
 0x1fb   : > { %v955_v62 = vadd.f32 %v954_v61, %v953_v57 }
 0x1fd   : > { %1363 = vpush %v955_v62 }
 0x1fe   : > { %1365 = vpush %v1004_v10 }
 0x206   : > { %s1362_s16 = spop %1361 }
 0x207   : > { %s584_s19 = smul.f32 %s1362_s16, %s2100_s28 }
 0x208   : > { %s588_s13 = smul.f32 %s1362_s16, %s1360_s15 }
 0x209   : > { %1195 = sst [smem:[#allocation3]] %s584_s19 }
 0x20a   : > { %s1191_s18 = sadd.f32 %s588_s13, %s584_s19 }
 0x20b   : > { %1197 = sst [smem:[#allocation3 + $0x1]] %s588_s13 }
 0x22e   : > { %s1364_s20 = spop %1363 }
 0x22f   : > { %s1366_s22 = spop %1365 }
 0x230   : > { %s1006_s17 = smax.f32 %s1492_s30, %s1366_s22 }
 0x231   : > { %v1007_v7 = vstv %s1006_s17 }
 0x232   : > { %1459 = vrcp.f32 %v1007_v7 }
 0x23b   : > { %v1180_v9 = vpop.xlane.xlu1 %1179 }
 0x23c   : > { %v1460_v12 = vpop.eup %1459  ;;  %v1181_v32 = vrot.slane %v1180_v9, 4 }
 0x23d   : > { %1367 = vpush %v1460_v12 }
 0x23e   : > { %v1182_v6 = vadd.f32 %v1181_v32, %v1180_v9 }
 0x240   : > { %v1183_v47 = vrot.slane %v1182_v6, 2 }
 0x242   : > { %v1184_v21 = vadd.f32 %v1183_v47, %v1182_v6 }
 0x244   : > { %v1185_v58 = vrot.slane %v1184_v21, 1 }
 0x246   : > { %v1186_v37 = vadd.f32 %v1185_v58, %v1184_v21 }
 0x248   : > { %1369 = vpush %v1186_v37 }
 0x26e   : > { %s1368_s21 = spop %1367 }
 0x26f   : > { %s1010_s23 = smul.f32 %s1368_s21, %s1364_s20 }
 0x271   : > { %s1192_s24 = sadd.f32 %s1191_s18, %s1010_s23 }
 0x272   : > { %1199 = sst [smem:[#allocation3 + $0x2]] %s1010_s23 }
 0x279   : > { %s1370_s25 = spop %1369 }
 0x27a   : > { %s1190_s26 = smul.f32 0.015625, %s1370_s25 }
 0x27c   : > { %s1193_s27 = sadd.f32 %s1192_s24, %s1190_s26 }
 0x27d   : > { %1201 = sst [smem:[#allocation3 + $0x3]] %s1190_s26 }
 0x27e   : > { %1203 = sst [smem:[#allocation3 + $0x4]] %s1193_s27 }
 0x27f PF: > { %p1375_p7 = scmp.eq.s32.totalorder %s1556_s14, 1  ;;  %s1461_s30 = scalar_lea.hbm %s2131_s10, 16 }
 0x280   : > { %p1462_p8 = scmp.ne.s32.totalorder %s2131_s10, %s1461_s30  ;;  %p1467_p11 = scmp.lt.u32.totalorder %s1461_s30, %s2131_s10 }
 0x282   : > { %p1463_p9 = pnand %p1462_p8, %p1375_p7 }
 0x284   : > { %p1464_p10 = pneg %p1463_p9 }
 0x286   : > { %p1469_p12 = pnand %p1467_p11, %p1464_p10 }
 0x288   : > { %1472 = shalt.err (!%p1469_p12)
}
 0x289   : > { %s1494_s19 = smov [#allocation3]  }
 0x28a   : > { %1372 = dma.smem_to_hbm (%p1375_p7), %s1494_s19, 16, %s2131_s10, [#allocation4]  }
 0x28b   : > { %1478 = dma.done.wait (%p1375_p7), [#allocation4], 16  }
 0x28c   : > { %1480 = vsyncadd (%p1375_p7), [#allocation4], 4294967280 }
 0x28d   : > { %1223 = sfence }
 0x28e PF: > { %s2144_s14 = sld [smem:[#allocation6_spill]] }
 0x294   : > { %s21_s13 = sadd.s32 1, %s2144_s14  }
 0x295   : > { %p18_p13 = scmp.ge.s32.totalorder %s21_s13, 4  }
 0x297   :  { %20 = sbr.rel (!%p18_p13) target bundleno = 1 (0x1), region = 118 }
 0x29e   :  { %1229 = vsyncpa [#allocation4], 1 }
 0x29f   :  { %1231 = vsyncpa [#allocation4 + $0x1], 1 }

</bundles_post_ra>
